<compile_context>
chip_gen: v7x
topology: tpu7x:2x2x1
jax: 0.10.0
libtpu: 0.0.40
codegen_flags: <defaults>
</compile_context>

<pallas_src>
import functools

import jax
import jax.numpy as jnp
from jax.experimental import pallas as pl
from jax.experimental.pallas import tpu as pltpu


# ---------------------------------------------------------------------------
# Fused kernel
# ---------------------------------------------------------------------------

def _bottleneck_kernel(x_ref, w1_ref, w2_ref, w3_ref, b1_ref, b2_ref, b3_ref,
                       o_ref, o1_pad_ref, *, th, dilation):
    # x_ref      : (1, H, W, Cin)    full image, resident across the strip loop
    # w1_ref     : (Cin, P)          conv1 weight (BN1 scale folded in)
    # w2_ref     : (9, P, P)         conv2 weight, tap-major (BN2 scale folded)
    # w3_ref     : (P, Cexp)         conv3 weight (BN3 scale folded in)
    # b*_ref     : (1, C)            folded BN shifts (float32)
    # o_ref      : (1, th, W, Cexp)  output row strip
    # o1_pad_ref : (H+2d, W+2d, P)   zero-padded conv1 output (VMEM scratch)
    d = dilation
    h = pl.program_id(1)
    n_strips = pl.num_programs(1) - 1
    W = x_ref.shape[2]

    # Once per image: clear the padded scratch so the conv2 zero-halo is valid.
    @pl.when(h == 0)
    def _():
        o1_pad_ref[...] = jnp.zeros_like(o1_pad_ref)

    # Stage A (h < n_strips): conv1 + bn1 + relu of row strip h, written into
    # the padded scratch at rows [d + h*th, d + h*th + th), cols [d, d+W).
    @pl.when(h < n_strips)
    def _():
        r0 = h * th
        xs = x_ref[0, pl.ds(r0, th), :, :].astype(w1_ref.dtype)      # (th,W,Cin)
        y1 = jnp.einsum('hwc,cp->hwp', xs, w1_ref[...],
                        preferred_element_type=jnp.float32)
        y1 = jnp.maximum(y1 + b1_ref[...], 0.0)                      # (th,W,P)
        o1_pad_ref[pl.ds(d + r0, th), pl.ds(d, W), :] = (
            y1.astype(o1_pad_ref.dtype))

    # Stage B (h >= 1): conv2 + bn2 + relu, conv3 + bn3 + residual + relu for
    # row strip h-1 (its top/bottom halo rows are already in the scratch).
    @pl.when(h >= 1)
    def _():
        r0 = (h - 1) * th
        P = w2_ref.shape[1]
        acc = jnp.zeros((th, W, P), jnp.float32)
        for ky in range(3):
            for kx in range(3):
                o1s = o1_pad_ref[pl.ds(r0 + ky * d, th), pl.ds(kx * d, W), :]
                acc = acc + jnp.einsum('hwp,pq->hwq', o1s,
                                       w2_ref[ky * 3 + kx],
                                       preferred_element_type=jnp.float32)
        y2 = jnp.maximum(acc + b2_ref[...], 0.0)                     # (th,W,P)
        y3 = jnp.einsum('hwp,pq->hwq', y2.astype(w3_ref.dtype), w3_ref[...],
                        preferred_element_type=jnp.float32) + b3_ref[...]
        res = x_ref[0, pl.ds(r0, th), :, :].astype(jnp.float32)
        o_ref[0] = jnp.maximum(y3 + res, 0.0).astype(o_ref.dtype)


# ---------------------------------------------------------------------------
# Wrapper
# ---------------------------------------------------------------------------

def _pick_strip_rows(H, dilation, target):
    """Largest divisor of H with dilation <= th <= target (with fallbacks)."""
    divisors = [t for t in range(1, H + 1) if H % t == 0]
    good = [t for t in divisors if dilation <= t <= target]
    if good:
        return max(good)
    big = [t for t in divisors if t >= dilation]
    return min(big) if big else H


def bottleneck_forward(x_nhwc, params, *, dilation=1, strip_rows=8,
                       compute_dtype=jnp.float32):
    """Fused Bottleneck forward on an NHWC input (inference-mode BN)."""
    N, H, W, Cin = x_nhwc.shape
    P = params['w1'].shape[1]
    Cexp = params['w3'].shape[1]
    if Cin != Cexp:
        # TODO(synk): stride>1 / downsample branch not implemented.
        raise ValueError("identity residual requires inplanes == planes * expansion")

    d = int(dilation)
    th = _pick_strip_rows(H, d, strip_rows)
    n_strips = H // th
    Hp, Wp = H + 2 * d, W + 2 * d
    f32 = jnp.float32

    # Fold BN scale into the conv weights (in f32), keep the shift as a bias.
    w1 = (params['w1'] * params['s1'][None, :]).astype(compute_dtype)
    w2 = (params['w2'] * params['s2'][None, None, :]).astype(compute_dtype)
    w3 = (params['w3'] * params['s3'][None, :]).astype(compute_dtype)
    b1 = params['b1'].reshape(1, P).astype(f32)
    b2 = params['b2'].reshape(1, P).astype(f32)
    b3 = params['b3'].reshape(1, Cexp).astype(f32)
    x = x_nhwc.astype(compute_dtype)

    # Explicit VMEM budget (keeps double-buffering alive on v7x's 64 MiB VMEM).
    esz = jnp.dtype(compute_dtype).itemsize
    vmem_est = (2 * H * W * Cin * esz            # resident image, dbl-buffered
                + 2 * th * W * Cexp * esz        # output strip, dbl-buffered
                + Hp * Wp * P * esz              # padded conv1-output scratch
                + (Cin * P + 9 * P * P + P * Cexp) * esz
                + 4 * (2 * P + Cexp))
    vmem_limit = int(min(max(4 * vmem_est, 16 << 20), 64 << 20))

    kernel = functools.partial(_bottleneck_kernel, th=th, dilation=d)
    return pl.pallas_call(
        kernel,
        out_shape=jax.ShapeDtypeStruct((N, H, W, Cexp), compute_dtype),
        grid=(N, n_strips + 1),
        in_specs=[
            pl.BlockSpec((1, H, W, Cin), lambda n, h: (n, 0, 0, 0)),
            pl.BlockSpec((Cin, P), lambda n, h: (0, 0)),
            pl.BlockSpec((9, P, P), lambda n, h: (0, 0, 0)),
            pl.BlockSpec((P, Cexp), lambda n, h: (0, 0)),
            pl.BlockSpec((1, P), lambda n, h: (0, 0)),
            pl.BlockSpec((1, P), lambda n, h: (0, 0)),
            pl.BlockSpec((1, Cexp), lambda n, h: (0, 0)),
        ],
        out_specs=pl.BlockSpec(
            (1, th, W, Cexp), lambda n, h: (n, jnp.maximum(h - 1, 0), 0, 0)),
        scratch_shapes=[pltpu.VMEM((Hp, Wp, P), compute_dtype)],
        compiler_params=pltpu.CompilerParams(
            dimension_semantics=("parallel", "arbitrary"),
            vmem_limit_bytes=vmem_limit),
    )(x, w1, w2, w3, b1, b2, b3)


def bottleneck_forward_nchw(x_nchw, params, **kwargs):
    """PyTorch-layout adapter.  Prefer the NHWC entry point end-to-end: each
    boundary transpose costs a full extra HBM read+write of the activation."""
    y = bottleneck_forward(jnp.transpose(x_nchw, (0, 2, 3, 1)), params, **kwargs)
    return jnp.transpose(y, (0, 3, 1, 2))


# ---------------------------------------------------------------------------
# Pure-JAX reference (for correctness check)
# ---------------------------------------------------------------------------

def bottleneck_reference(x_nhwc, params, *, dilation=1):
    dn = ('NHWC', 'HWIO', 'NHWC')
    P = params['w1'].shape[1]
    Cexp = params['w3'].shape[1]
    x = x_nhwc.astype(jnp.float32)
    d = dilation

    y = jax.lax.conv_general_dilated(x, params['w1'].reshape(1, 1, -1, P),
                                     (1, 1), 'VALID', dimension_numbers=dn)
    y = jnp.maximum(y * params['s1'] + params['b1'], 0.0)
    y = jax.lax.conv_general_dilated(y, params['w2'].reshape(3, 3, P, P),
                                     (1, 1), [(d, d), (d, d)],
                                     rhs_dilation=(d, d), dimension_numbers=dn)
    y = jnp.maximum(y * params['s2'] + params['b2'], 0.0)
    y = jax.lax.conv_general_dilated(y, params['w3'].reshape(1, 1, P, Cexp),
                                     (1, 1), 'VALID', dimension_numbers=dn)
    y = y * params['s3'] + params['b3']
    return jnp.maximum(y + x, 0.0)


# ---------------------------------------------------------------------------
# Deterministic parameter construction
# ---------------------------------------------------------------------------

def make_params(key, inplanes, planes, expansion=4, eps=1e-5):
    ks = jax.random.split(key, 15)

    def bn_fold(kg, kb, km, kv, c):
        gamma = 1.0 + 0.1 * jax.random.normal(kg, (c,), jnp.float32)
        beta = 0.1 * jax.random.normal(kb, (c,), jnp.float32)
        mean = 0.1 * jax.random.normal(km, (c,), jnp.float32)
        var = jnp.abs(jax.random.normal(kv, (c,), jnp.float32)) + 0.5
        scale = gamma / jnp.sqrt(var + eps)
        shift = beta - mean * scale
        return scale, shift

    cexp = planes * expansion
    w1 = 0.2 * jax.random.normal(ks[0], (inplanes, planes), jnp.float32)
    w2 = 0.2 * jax.random.normal(ks[1], (9, planes, planes), jnp.float32)
    w3 = 0.2 * jax.random.normal(ks[2], (planes, cexp), jnp.float32)
    s1, b1 = bn_fold(ks[3], ks[4], ks[5], ks[6], planes)
    s2, b2 = bn_fold(ks[7], ks[8], ks[9], ks[10], planes)
    s3, b3 = bn_fold(ks[11], ks[12], ks[13], ks[14], cexp)
    return dict(w1=w1, w2=w2, w3=w3, s1=s1, b1=b1, s2=s2, b2=b2, s3=s3, b3=b3)


# ---------------------------------------------------------------------------
# Main
# ---------------------------------------------------------------------------

if __name__ == "__main__":
    # Non-first ResNet block: inplanes == planes*expansion, stride=1, no
    # downsample -> identity residual (the module defaults).
    N, planes, Hs, Ws = 2, 4, 16, 16
    inplanes = planes * 4

    key = jax.random.PRNGKey(0)
    kx, kp = jax.random.split(key)
    x = jax.random.normal(kx, (N, Hs, Ws, inplanes), jnp.float32)   # NHWC
    params = make_params(kp, inplanes, planes)

    # Exact module semantics (f32), dilation=1.
    out = jax.block_until_ready(bottleneck_forward(x, params, dilation=1))
    ref = jax.block_until_ready(bottleneck_reference(x, params, dilation=1))
    assert out.shape == (N, Hs, Ws, inplanes), out.shape
    assert jnp.allclose(out, ref, atol=1e-4, rtol=1e-4), float(
        jnp.max(jnp.abs(out - ref)))

    # Dilated conv2 (dilation=2, padding=2), still f32.
    out_d2 = jax.block_until_ready(bottleneck_forward(x, params, dilation=2))
    ref_d2 = bottleneck_reference(x, params, dilation=2)
    assert jnp.allclose(out_d2, ref_d2, atol=1e-4, rtol=1e-4), float(
        jnp.max(jnp.abs(out_d2 - ref_d2)))

    # bf16 MXU path (bf16 operands, f32 accumulation + f32 epilogue).
    out_bf = jax.block_until_ready(
        bottleneck_forward(x, params, dilation=1, compute_dtype=jnp.bfloat16))
    bf_err = float(jnp.max(jnp.abs(out_bf.astype(jnp.float32) - ref)))
    assert bf_err <= 0.05 * float(jnp.max(jnp.abs(ref))) + 0.05, bf_err

    # NCHW adapter (PyTorch layout parity).
    out_nchw = jax.block_until_ready(
        bottleneck_forward_nchw(jnp.transpose(x, (0, 3, 1, 2)), params))
    assert jnp.allclose(out_nchw, jnp.transpose(ref, (0, 3, 1, 2)),
                        atol=1e-4, rtol=1e-4)

    print("KERNEL_OK")
</pallas_src>

<mosaic_0001>
module attributes {stable_mosaic.version = 11 : i64} {
  func.func @_bottleneck_kernel(%arg0: i32, %arg1: i32, %arg2: memref<1x16x16x16xf32, #tpu.memory_space<vmem>>, %arg3: memref<16x4xf32, #tpu.memory_space<vmem>>, %arg4: memref<9x4x4xf32, #tpu.memory_space<vmem>>, %arg5: memref<4x16xf32, #tpu.memory_space<vmem>>, %arg6: memref<1x4xf32, #tpu.memory_space<vmem>>, %arg7: memref<1x4xf32, #tpu.memory_space<vmem>>, %arg8: memref<1x16xf32, #tpu.memory_space<vmem>>, %arg9: memref<1x8x16x16xf32, #tpu.memory_space<vmem>>, %arg10: memref<18x18x4xf32, #tpu.memory_space<vmem>>) attributes {dimension_semantics = [#tpu.dimension_semantics<parallel>, #tpu.dimension_semantics<arbitrary>], iteration_bounds = array<i64: 2, 3>, scalar_prefetch = 0 : i64, scratch_operands = 1 : i64, tpu.core_type = #tpu.core_type<tc>, window_params = [{transform_indices = @transform_0, window_bounds = array<i64: 1, 16, 16, 16>}, {pipeline_mode = #tpu.pipeline_mode<synchronous>, transform_indices = @transform_1, window_bounds = array<i64: 16, 4>}, {pipeline_mode = #tpu.pipeline_mode<synchronous>, transform_indices = @transform_2, window_bounds = array<i64: 9, 4, 4>}, {pipeline_mode = #tpu.pipeline_mode<synchronous>, transform_indices = @transform_3, window_bounds = array<i64: 4, 16>}, {pipeline_mode = #tpu.pipeline_mode<synchronous>, transform_indices = @transform_4, window_bounds = array<i64: 1, 4>}, {pipeline_mode = #tpu.pipeline_mode<synchronous>, transform_indices = @transform_5, window_bounds = array<i64: 1, 4>}, {pipeline_mode = #tpu.pipeline_mode<synchronous>, transform_indices = @transform_6, window_bounds = array<i64: 1, 16>}, {transform_indices = @transform_7, window_bounds = array<i64: 1, 8, 16, 16>}]} {
    %c0_i32 = arith.constant 0 : i32
    %0 = arith.cmpi eq, %arg1, %c0_i32 : i32
    %1 = arith.extui %0 : i1 to i32
    %c0_i32_0 = arith.constant 0 : i32
    %2 = arith.cmpi ne, %1, %c0_i32_0 : i32
    scf.if %2 {
      %cst = arith.constant 0.000000e+00 : f32
      %9 = vector.broadcast %cst : f32 to vector<18x18x4xf32>
      %c0 = arith.constant 0 : index
      %c0_3 = arith.constant 0 : index
      %c0_4 = arith.constant 0 : index
      %10 = vector.load %arg10[%c0, %c0_3, %c0_4] : memref<18x18x4xf32, #tpu.memory_space<vmem>>, vector<18x18x4xf32>
      tpu.vector_store %arg10[%c0, %c0_3, %c0_4], %9 {strides = array<i32>} : memref<18x18x4xf32, #tpu.memory_space<vmem>>, vector<18x18x4xf32>,
    } else {
    }
    %c2_i32 = arith.constant 2 : i32
    %3 = arith.cmpi slt, %arg1, %c2_i32 : i32
    %4 = arith.extui %3 : i1 to i32
    %c0_i32_1 = arith.constant 0 : i32
    %5 = arith.cmpi ne, %4, %c0_i32_1 : i32
    scf.if %5 {
      %c8_i32 = arith.constant 8 : i32
      %9 = arith.muli %arg1, %c8_i32 : i32
      %c0 = arith.constant 0 : index
      %10 = arith.index_cast %9 : i32 to index
      %c0_3 = arith.constant 0 : index
      %c0_4 = arith.constant 0 : index
      %11 = vector.load %arg2[%c0, %10, %c0_3, %c0_4] : memref<1x16x16x16xf32, #tpu.memory_space<vmem>>, vector<1x8x16x16xf32>
      %12 = vector.shape_cast %11 : vector<1x8x16x16xf32> to vector<8x16x16xf32>
      %c0_5 = arith.constant 0 : index
      %c0_6 = arith.constant 0 : index
      %13 = vector.load %arg3[%c0_5, %c0_6] : memref<16x4xf32, #tpu.memory_space<vmem>>, vector<16x4xf32>
      "tpu.trace_start"() <{level = 10 : i32, message = "hwc,cp->hwp"}> : () -> ()
      %cst = arith.constant dense<0.000000e+00> : vector<8x16x4xf32>
      %14 = tpu.matmul %12, %13, %cst {dimension_numbers = #tpu.dot_dimension_numbers<[2], [0], [0, 1], [1], [0, 0, 0, 1, 1, 1], [], []>} : vector<8x16x16xf32>, vector<16x4xf32>, vector<8x16x4xf32> -> vector<8x16x4xf32>
      "tpu.trace_stop"() : () -> ()
      %c0_7 = arith.constant 0 : index
      %c0_8 = arith.constant 0 : index
      %15 = vector.load %arg6[%c0_7, %c0_8] : memref<1x4xf32, #tpu.memory_space<vmem>>, vector<1x4xf32>
      %16 = vector.shape_cast %15 : vector<1x4xf32> to vector<1x1x4xf32>
      %17 = vector.broadcast %16 : vector<1x1x4xf32> to vector<8x16x4xf32>
      %18 = arith.addf %14, %17 : vector<8x16x4xf32>
      %cst_9 = arith.constant 0.000000e+00 : f32
      %19 = vector.broadcast %cst_9 : f32 to vector<8x16x4xf32>
      %20 = arith.maximumf %18, %19 : vector<8x16x4xf32>
      %c1_i32_10 = arith.constant 1 : i32
      %21 = arith.addi %c1_i32_10, %9 : i32
      %22 = arith.index_cast %21 : i32 to index
      %c1 = arith.constant 1 : index
      %c0_11 = arith.constant 0 : index
      %23 = vector.load %arg10[%22, %c1, %c0_11] : memref<18x18x4xf32, #tpu.memory_space<vmem>>, vector<8x16x4xf32>
      tpu.vector_store %arg10[%22, %c1, %c0_11], %20 {strides = array<i32>} : memref<18x18x4xf32, #tpu.memory_space<vmem>>, vector<8x16x4xf32>,
    } else {
    }
    %c1_i32 = arith.constant 1 : i32
    %6 = arith.cmpi sge, %arg1, %c1_i32 : i32
    %7 = arith.extui %6 : i1 to i32
    %c0_i32_2 = arith.constant 0 : i32
    %8 = arith.cmpi ne, %7, %c0_i32_2 : i32
    scf.if %8 {
      %c1_i32_3 = arith.constant 1 : i32
      %9 = arith.subi %arg1, %c1_i32_3 : i32
      %c8_i32 = arith.constant 8 : i32
      %10 = arith.muli %9, %c8_i32 : i32
      %cst = arith.constant 0.000000e+00 : f32
      %11 = vector.broadcast %cst : f32 to vector<8x16x4xf32>
      %c0_i32_4 = arith.constant 0 : i32
      %12 = arith.addi %10, %c0_i32_4 : i32
      %13 = arith.index_cast %12 : i32 to index
      %c0 = arith.constant 0 : index
      %c0_5 = arith.constant 0 : index
      %14 = vector.load %arg10[%13, %c0, %c0_5] : memref<18x18x4xf32, #tpu.memory_space<vmem>>, vector<8x16x4xf32>
      %c0_6 = arith.constant 0 : index
      %c0_7 = arith.constant 0 : index
      %c0_8 = arith.constant 0 : index
      %15 = vector.load %arg4[%c0_6, %c0_7, %c0_8] : memref<9x4x4xf32, #tpu.memory_space<vmem>>, vector<1x4x4xf32>
      %16 = vector.shape_cast %15 : vector<1x4x4xf32> to vector<4x4xf32>
      "tpu.trace_start"() <{level = 10 : i32, message = "hwp,pq->hwq"}> : () -> ()
      %cst_9 = arith.constant dense<0.000000e+00> : vector<8x16x4xf32>
      %17 = tpu.matmul %14, %16, %cst_9 {dimension_numbers = #tpu.dot_dimension_numbers<[2], [0], [0, 1], [1], [0, 0, 0, 1, 1, 1], [], []>} : vector<8x16x4xf32>, vector<4x4xf32>, vector<8x16x4xf32> -> vector<8x16x4xf32>
      "tpu.trace_stop"() : () -> ()
      %18 = arith.addf %11, %17 : vector<8x16x4xf32>
      %c0_i32_10 = arith.constant 0 : i32
      %19 = arith.addi %10, %c0_i32_10 : i32
      %20 = arith.index_cast %19 : i32 to index
      %c1 = arith.constant 1 : index
      %c0_11 = arith.constant 0 : index
      %21 = vector.load %arg10[%20, %c1, %c0_11] : memref<18x18x4xf32, #tpu.memory_space<vmem>>, vector<8x16x4xf32>
      %c1_12 = arith.constant 1 : index
      %c0_13 = arith.constant 0 : index
      %c0_14 = arith.constant 0 : index
      %22 = vector.load %arg4[%c1_12, %c0_13, %c0_14] : memref<9x4x4xf32, #tpu.memory_space<vmem>>, vector<1x4x4xf32>
      %23 = vector.shape_cast %22 : vector<1x4x4xf32> to vector<4x4xf32>
      "tpu.trace_start"() <{level = 10 : i32, message = "hwp,pq->hwq"}> : () -> ()
      %cst_15 = arith.constant dense<0.000000e+00> : vector<8x16x4xf32>
      %24 = tpu.matmul %21, %23, %cst_15 {dimension_numbers = #tpu.dot_dimension_numbers<[2], [0], [0, 1], [1], [0, 0, 0, 1, 1, 1], [], []>} : vector<8x16x4xf32>, vector<4x4xf32>, vector<8x16x4xf32> -> vector<8x16x4xf32>
      "tpu.trace_stop"() : () -> ()
      %25 = arith.addf %18, %24 : vector<8x16x4xf32>
      %c0_i32_16 = arith.constant 0 : i32
      %26 = arith.addi %10, %c0_i32_16 : i32
      %27 = arith.index_cast %26 : i32 to index
      %c2 = arith.constant 2 : index
      %c0_17 = arith.constant 0 : index
      %28 = vector.load %arg10[%27, %c2, %c0_17] : memref<18x18x4xf32, #tpu.memory_space<vmem>>, vector<8x16x4xf32>
      %c2_18 = arith.constant 2 : index
      %c0_19 = arith.constant 0 : index
      %c0_20 = arith.constant 0 : index
      %29 = vector.load %arg4[%c2_18, %c0_19, %c0_20] : memref<9x4x4xf32, #tpu.memory_space<vmem>>, vector<1x4x4xf32>
      %30 = vector.shape_cast %29 : vector<1x4x4xf32> to vector<4x4xf32>
      "tpu.trace_start"() <{level = 10 : i32, message = "hwp,pq->hwq"}> : () -> ()
      %cst_21 = arith.constant dense<0.000000e+00> : vector<8x16x4xf32>
      %31 = tpu.matmul %28, %30, %cst_21 {dimension_numbers = #tpu.dot_dimension_numbers<[2], [0], [0, 1], [1], [0, 0, 0, 1, 1, 1], [], []>} : vector<8x16x4xf32>, vector<4x4xf32>, vector<8x16x4xf32> -> vector<8x16x4xf32>
      "tpu.trace_stop"() : () -> ()
      %32 = arith.addf %25, %31 : vector<8x16x4xf32>
      %c1_i32_22 = arith.constant 1 : i32
      %33 = arith.addi %10, %c1_i32_22 : i32
      %34 = arith.index_cast %33 : i32 to index
      %c0_23 = arith.constant 0 : index
      %c0_24 = arith.constant 0 : index
      %35 = vector.load %arg10[%34, %c0_23, %c0_24] : memref<18x18x4xf32, #tpu.memory_space<vmem>>, vector<8x16x4xf32>
      %c3 = arith.constant 3 : index
      %c0_25 = arith.constant 0 : index
      %c0_26 = arith.constant 0 : index
      %36 = vector.load %arg4[%c3, %c0_25, %c0_26] : memref<9x4x4xf32, #tpu.memory_space<vmem>>, vector<1x4x4xf32>
      %37 = vector.shape_cast %36 : vector<1x4x4xf32> to vector<4x4xf32>
      "tpu.trace_start"() <{level = 10 : i32, message = "hwp,pq->hwq"}> : () -> ()
      %cst_27 = arith.constant dense<0.000000e+00> : vector<8x16x4xf32>
      %38 = tpu.matmul %35, %37, %cst_27 {dimension_numbers = #tpu.dot_dimension_numbers<[2], [0], [0, 1], [1], [0, 0, 0, 1, 1, 1], [], []>} : vector<8x16x4xf32>, vector<4x4xf32>, vector<8x16x4xf32> -> vector<8x16x4xf32>
      "tpu.trace_stop"() : () -> ()
      %39 = arith.addf %32, %38 : vector<8x16x4xf32>
      %c1_i32_28 = arith.constant 1 : i32
      %40 = arith.addi %10, %c1_i32_28 : i32
      %41 = arith.index_cast %40 : i32 to index
      %c1_29 = arith.constant 1 : index
      %c0_30 = arith.constant 0 : index
      %42 = vector.load %arg10[%41, %c1_29, %c0_30] : memref<18x18x4xf32, #tpu.memory_space<vmem>>, vector<8x16x4xf32>
      %c4 = arith.constant 4 : index
      %c0_31 = arith.constant 0 : index
      %c0_32 = arith.constant 0 : index
      %43 = vector.load %arg4[%c4, %c0_31, %c0_32] : memref<9x4x4xf32, #tpu.memory_space<vmem>>, vector<1x4x4xf32>
      %44 = vector.shape_cast %43 : vector<1x4x4xf32> to vector<4x4xf32>
      "tpu.trace_start"() <{level = 10 : i32, message = "hwp,pq->hwq"}> : () -> ()
      %cst_33 = arith.constant dense<0.000000e+00> : vector<8x16x4xf32>
      %45 = tpu.matmul %42, %44, %cst_33 {dimension_numbers = #tpu.dot_dimension_numbers<[2], [0], [0, 1], [1], [0, 0, 0, 1, 1, 1], [], []>} : vector<8x16x4xf32>, vector<4x4xf32>, vector<8x16x4xf32> -> vector<8x16x4xf32>
      "tpu.trace_stop"() : () -> ()
      %46 = arith.addf %39, %45 : vector<8x16x4xf32>
      %c1_i32_34 = arith.constant 1 : i32
      %47 = arith.addi %10, %c1_i32_34 : i32
      %48 = arith.index_cast %47 : i32 to index
      %c2_35 = arith.constant 2 : index
      %c0_36 = arith.constant 0 : index
      %49 = vector.load %arg10[%48, %c2_35, %c0_36] : memref<18x18x4xf32, #tpu.memory_space<vmem>>, vector<8x16x4xf32>
      %c5 = arith.constant 5 : index
      %c0_37 = arith.constant 0 : index
      %c0_38 = arith.constant 0 : index
      %50 = vector.load %arg4[%c5, %c0_37, %c0_38] : memref<9x4x4xf32, #tpu.memory_space<vmem>>, vector<1x4x4xf32>
      %51 = vector.shape_cast %50 : vector<1x4x4xf32> to vector<4x4xf32>
      "tpu.trace_start"() <{level = 10 : i32, message = "hwp,pq->hwq"}> : () -> ()
      %cst_39 = arith.constant dense<0.000000e+00> : vector<8x16x4xf32>
      %52 = tpu.matmul %49, %51, %cst_39 {dimension_numbers = #tpu.dot_dimension_numbers<[2], [0], [0, 1], [1], [0, 0, 0, 1, 1, 1], [], []>} : vector<8x16x4xf32>, vector<4x4xf32>, vector<8x16x4xf32> -> vector<8x16x4xf32>
      "tpu.trace_stop"() : () -> ()
      %53 = arith.addf %46, %52 : vector<8x16x4xf32>
      %c2_i32_40 = arith.constant 2 : i32
      %54 = arith.addi %10, %c2_i32_40 : i32
      %55 = arith.index_cast %54 : i32 to index
      %c0_41 = arith.constant 0 : index
      %c0_42 = arith.constant 0 : index
      %56 = vector.load %arg10[%55, %c0_41, %c0_42] : memref<18x18x4xf32, #tpu.memory_space<vmem>>, vector<8x16x4xf32>
      %c6 = arith.constant 6 : index
      %c0_43 = arith.constant 0 : index
      %c0_44 = arith.constant 0 : index
      %57 = vector.load %arg4[%c6, %c0_43, %c0_44] : memref<9x4x4xf32, #tpu.memory_space<vmem>>, vector<1x4x4xf32>
      %58 = vector.shape_cast %57 : vector<1x4x4xf32> to vector<4x4xf32>
      "tpu.trace_start"() <{level = 10 : i32, message = "hwp,pq->hwq"}> : () -> ()
      %cst_45 = arith.constant dense<0.000000e+00> : vector<8x16x4xf32>
      %59 = tpu.matmul %56, %58, %cst_45 {dimension_numbers = #tpu.dot_dimension_numbers<[2], [0], [0, 1], [1], [0, 0, 0, 1, 1, 1], [], []>} : vector<8x16x4xf32>, vector<4x4xf32>, vector<8x16x4xf32> -> vector<8x16x4xf32>
      "tpu.trace_stop"() : () -> ()
      %60 = arith.addf %53, %59 : vector<8x16x4xf32>
      %c2_i32_46 = arith.constant 2 : i32
      %61 = arith.addi %10, %c2_i32_46 : i32
      %62 = arith.index_cast %61 : i32 to index
      %c1_47 = arith.constant 1 : index
      %c0_48 = arith.constant 0 : index
      %63 = vector.load %arg10[%62, %c1_47, %c0_48] : memref<18x18x4xf32, #tpu.memory_space<vmem>>, vector<8x16x4xf32>
      %c7 = arith.constant 7 : index
      %c0_49 = arith.constant 0 : index
      %c0_50 = arith.constant 0 : index
      %64 = vector.load %arg4[%c7, %c0_49, %c0_50] : memref<9x4x4xf32, #tpu.memory_space<vmem>>, vector<1x4x4xf32>
      %65 = vector.shape_cast %64 : vector<1x4x4xf32> to vector<4x4xf32>
      "tpu.trace_start"() <{level = 10 : i32, message = "hwp,pq->hwq"}> : () -> ()
      %cst_51 = arith.constant dense<0.000000e+00> : vector<8x16x4xf32>
      %66 = tpu.matmul %63, %65, %cst_51 {dimension_numbers = #tpu.dot_dimension_numbers<[2], [0], [0, 1], [1], [0, 0, 0, 1, 1, 1], [], []>} : vector<8x16x4xf32>, vector<4x4xf32>, vector<8x16x4xf32> -> vector<8x16x4xf32>
      "tpu.trace_stop"() : () -> ()
      %67 = arith.addf %60, %66 : vector<8x16x4xf32>
      %c2_i32_52 = arith.constant 2 : i32
      %68 = arith.addi %10, %c2_i32_52 : i32
      %69 = arith.index_cast %68 : i32 to index
      %c2_53 = arith.constant 2 : index
      %c0_54 = arith.constant 0 : index
      %70 = vector.load %arg10[%69, %c2_53, %c0_54] : memref<18x18x4xf32, #tpu.memory_space<vmem>>, vector<8x16x4xf32>
      %c8 = arith.constant 8 : index
      %c0_55 = arith.constant 0 : index
      %c0_56 = arith.constant 0 : index
      %71 = vector.load %arg4[%c8, %c0_55, %c0_56] : memref<9x4x4xf32, #tpu.memory_space<vmem>>, vector<1x4x4xf32>
      %72 = vector.shape_cast %71 : vector<1x4x4xf32> to vector<4x4xf32>
      "tpu.trace_start"() <{level = 10 : i32, message = "hwp,pq->hwq"}> : () -> ()
      %cst_57 = arith.constant dense<0.000000e+00> : vector<8x16x4xf32>
      %73 = tpu.matmul %70, %72, %cst_57 {dimension_numbers = #tpu.dot_dimension_numbers<[2], [0], [0, 1], [1], [0, 0, 0, 1, 1, 1], [], []>} : vector<8x16x4xf32>, vector<4x4xf32>, vector<8x16x4xf32> -> vector<8x16x4xf32>
      "tpu.trace_stop"() : () -> ()
      %74 = arith.addf %67, %73 : vector<8x16x4xf32>
      %c0_58 = arith.constant 0 : index
      %c0_59 = arith.constant 0 : index
      %75 = vector.load %arg7[%c0_58, %c0_59] : memref<1x4xf32, #tpu.memory_space<vmem>>, vector<1x4xf32>
      %76 = vector.shape_cast %75 : vector<1x4xf32> to vector<1x1x4xf32>
      %77 = vector.broadcast %76 : vector<1x1x4xf32> to vector<8x16x4xf32>
      %78 = arith.addf %74, %77 : vector<8x16x4xf32>
      %cst_60 = arith.constant 0.000000e+00 : f32
      %79 = vector.broadcast %cst_60 : f32 to vector<8x16x4xf32>
      %80 = arith.maximumf %78, %79 : vector<8x16x4xf32>
      %c0_61 = arith.constant 0 : index
      %c0_62 = arith.constant 0 : index
      %81 = vector.load %arg5[%c0_61, %c0_62] : memref<4x16xf32, #tpu.memory_space<vmem>>, vector<4x16xf32>
      "tpu.trace_start"() <{level = 10 : i32, message = "hwp,pq->hwq"}> : () -> ()
      %cst_63 = arith.constant dense<0.000000e+00> : vector<8x16x16xf32>
      %82 = tpu.matmul %80, %81, %cst_63 {dimension_numbers = #tpu.dot_dimension_numbers<[2], [0], [0, 1], [1], [0, 0, 0, 1, 1, 1], [], []>} : vector<8x16x4xf32>, vector<4x16xf32>, vector<8x16x16xf32> -> vector<8x16x16xf32>
      "tpu.trace_stop"() : () -> ()
      %c0_64 = arith.constant 0 : index
      %c0_65 = arith.constant 0 : index
      %83 = vector.load %arg8[%c0_64, %c0_65] : memref<1x16xf32, #tpu.memory_space<vmem>>, vector<1x16xf32>
      %84 = vector.shape_cast %83 : vector<1x16xf32> to vector<1x1x16xf32>
      %85 = vector.broadcast %84 : vector<1x1x16xf32> to vector<8x16x16xf32>
      %86 = arith.addf %82, %85 : vector<8x16x16xf32>
      %c0_66 = arith.constant 0 : index
      %87 = arith.index_cast %10 : i32 to index
      %c0_67 = arith.constant 0 : index
      %c0_68 = arith.constant 0 : index
      %88 = vector.load %arg2[%c0_66, %87, %c0_67, %c0_68] : memref<1x16x16x16xf32, #tpu.memory_space<vmem>>, vector<1x8x16x16xf32>
      %89 = vector.shape_cast %88 : vector<1x8x16x16xf32> to vector<8x16x16xf32>
      %90 = arith.addf %86, %89 : vector<8x16x16xf32>
      %cst_69 = arith.constant 0.000000e+00 : f32
      %91 = vector.broadcast %cst_69 : f32 to vector<8x16x16xf32>
      %92 = arith.maximumf %90, %91 : vector<8x16x16xf32>
      %c0_70 = arith.constant 0 : index
      %c0_71 = arith.constant 0 : index
      %c0_72 = arith.constant 0 : index
      %c0_73 = arith.constant 0 : index
      %93 = vector.load %arg9[%c0_70, %c0_71, %c0_72, %c0_73] : memref<1x8x16x16xf32, #tpu.memory_space<vmem>>, vector<1x8x16x16xf32>
      %94 = vector.shape_cast %93 : vector<1x8x16x16xf32> to vector<8x16x16xf32>
      %95 = vector.shape_cast %92 : vector<8x16x16xf32> to vector<1x8x16x16xf32>
      tpu.vector_store %arg9[%c0_70, %c0_71, %c0_72, %c0_73], %95 {strides = array<i32>} : memref<1x8x16x16xf32, #tpu.memory_space<vmem>>, vector<1x8x16x16xf32>,
    } else {
    }
    return
  }
  func.func @transform_0(%arg0: i32, %arg1: i32) -> (i32, i32, i32, i32) {
    %c0_i32 = arith.constant 0 : i32
    %c0_i32_0 = arith.constant 0 : i32
    %c0_i32_1 = arith.constant 0 : i32
    %c0_i32_2 = arith.constant 0 : i32
    return %arg0, %c0_i32, %c0_i32_0, %c0_i32_1 : i32, i32, i32, i32
  }
  func.func @transform_1(%arg0: i32, %arg1: i32) -> (i32, i32) {
    %c0_i32 = arith.constant 0 : i32
    %c0_i32_0 = arith.constant 0 : i32
    %c0_i32_1 = arith.constant 0 : i32
    return %c0_i32, %c0_i32_0 : i32, i32
  }
  func.func @transform_2(%arg0: i32, %arg1: i32) -> (i32, i32, i32) {
    %c0_i32 = arith.constant 0 : i32
    %c0_i32_0 = arith.constant 0 : i32
    %c0_i32_1 = arith.constant 0 : i32
    %c0_i32_2 = arith.constant 0 : i32
    return %c0_i32, %c0_i32_0, %c0_i32_1 : i32, i32, i32
  }
  func.func @transform_3(%arg0: i32, %arg1: i32) -> (i32, i32) {
    %c0_i32 = arith.constant 0 : i32
    %c0_i32_0 = arith.constant 0 : i32
    %c0_i32_1 = arith.constant 0 : i32
    return %c0_i32, %c0_i32_0 : i32, i32
  }
  func.func @transform_4(%arg0: i32, %arg1: i32) -> (i32, i32) {
    %c0_i32 = arith.constant 0 : i32
    %c0_i32_0 = arith.constant 0 : i32
    %c0_i32_1 = arith.constant 0 : i32
    return %c0_i32, %c0_i32_0 : i32, i32
  }
  func.func @transform_5(%arg0: i32, %arg1: i32) -> (i32, i32) {
    %c0_i32 = arith.constant 0 : i32
    %c0_i32_0 = arith.constant 0 : i32
    %c0_i32_1 = arith.constant 0 : i32
    return %c0_i32, %c0_i32_0 : i32, i32
  }
  func.func @transform_6(%arg0: i32, %arg1: i32) -> (i32, i32) {
    %c0_i32 = arith.constant 0 : i32
    %c0_i32_0 = arith.constant 0 : i32
    %c0_i32_1 = arith.constant 0 : i32
    return %c0_i32, %c0_i32_0 : i32, i32
  }
  func.func @transform_7(%arg0: i32, %arg1: i32) -> (i32, i32, i32, i32) {
    %c1_i32 = arith.constant 1 : i32
    %0 = arith.subi %arg1, %c1_i32 : i32
    %c0_i32 = arith.constant 0 : i32
    %1 = arith.maxsi %0, %c0_i32 : i32
    %c0_i32_0 = arith.constant 0 : i32
    %c0_i32_1 = arith.constant 0 : i32
    %c0_i32_2 = arith.constant 0 : i32
    return %arg0, %1, %c0_i32_0, %c0_i32_1 : i32, i32, i32, i32
  }
}

</mosaic_0001>

<bundles_post_ra>
// kernel: tpu_custom_call.1
= control target key start
LH: loop header
LB: loop body
LE: loop exit
PB: predicated region body
PF: predicated region fallthrough
CT: control target
= control target key end

     0   :  { %12 = vsyncpa [#allocation4], 0  ;;  %s5373_s0 = inlined_call_operand.hbm [shape: f32[2,16,16,16], index: 0, kind: input, shape index: {}]   ;;  %s5374_s1 = inlined_call_operand.vmem [shape: f32[16,4], index: 1, kind: input, shape index: {}]   ;;  %s5375_s2 = inlined_call_operand.vmem [shape: f32[9,4,4], index: 2, kind: input, shape index: {}]   ;;  %s5376_s3 = inlined_call_operand.vmem [shape: f32[4,16], index: 3, kind: input, shape index: {}]   ;;  %s5377_s4 = inlined_call_operand.vmem [shape: f32[1,4], index: 4, kind: input, shape index: {}]   ;;  %s5378_s5 = inlined_call_operand.vmem [shape: f32[1,4], index: 5, kind: input, shape index: {}]   ;;  %s5379_s6 = inlined_call_operand.vmem [shape: f32[1,16], index: 6, kind: input, shape index: {}]   ;;  %s5380_s7 = inlined_call_operand.hbm [shape: f32[2,16,16,16], index: 7, kind: output, shape index: {}]  }
   0x1   :  { %14 = vsyncpa [#allocation4 + $0x1], 0 }
   0x2   :  { %15 = vsyncpa [#allocation5], 0 }
   0x3   :  { %17 = vsyncpa [#allocation5 + $0x1], 0  ;;  %s4397_s24 = smov 0   ;;  %s4399_s25 = smov 0  }
   0x4   :  { %s4401_s26 = smov 0   ;;  %s4403_s27 = smov 0  }
   0x5   :  { %s4405_s28 = smov 0   ;;  %s4407_s29 = smov 0  }
   0x6   :  { %s4409_s30 = smov 0   ;;  %s4411_s8 = smov 0  }
   0x7   :  { %s4413_s9 = smov 0   ;;  %s4415_s10 = smov 0  }
   0x8   :  { %s4417_s11 = smov 0  }
   0x9 LB: > { %5387 = sst [smem:[#allocation9_spill]] %s4308_s24  ;;  %s3131_s12 = sadd.s32 4294967295, %s4348_s11   ;;  %s4348_s11 = sphi %s4417_s11, %s23_s11   ;;  %s4344_s10 = sphi %s4415_s10, %s5415_s10   ;;  %s4340_s9 = sphi %s4413_s9, %s5414_s9   ;;  %s4336_s8 = sphi %s4411_s8, %s5413_s8   ;;  %s4332_s30 = sphi %s4409_s30, %s5404_s30   ;;  %s4328_s29 = sphi %s4407_s29, %s5412_s29   ;;  %s4324_s28 = sphi %s4405_s28, %s5411_s28   ;;  %s4320_s27 = sphi %s4403_s27, %s5410_s27   ;;  %s4316_s26 = sphi %s4401_s26, %s5409_s26   ;;  %s4312_s25 = sphi %s4399_s25, %s5408_s25   ;;  %s4308_s24 = sphi %s4397_s24, %s5407_s24  }
   0xa   : > { %5388 = sst [smem:[#allocation10_spill]] %s4340_s9  ;;  %s32_s14 = sadd.s32 1, %s4340_s9 }
   0xb   : > { %s35_s15 = sadd.s32 1, %s4344_s10  ;;  %p33_p0 = scmp.ge.s32.totalorder %s32_s14, 3 }
   0xc   : > { %s42_s16 = sadd.s32 1, %s4328_s29  ;;  %p49_p1 = scmp.ne.s32.totalorder %s4328_s29, %s4324_s28 }
   0xd   : > { %p50_p2 = scmp.eq.s32.totalorder %s4348_s11, 0  ;;  %s5417_s14 = smov (%p33_p0, %s32_s14), 0 }
   0xe   : > { %5389 = sst [smem:[#allocation11_spill]] %s5417_s14  ;;  %s5419_s15 = smov (!%p33_p0, %s35_s15), %s4344_s10 }
   0xf   : > { %p4461_p3 = por %p50_p2, %p49_p1  ;;  %p55_p4 = scmp.ne.s32.totalorder %s4324_s28, %s4320_s27 }
  0x10   : > { %p37_p5 = scmp.ge.s32.totalorder %s5419_s15, 2  ;;  %p56_p6 = scmp.eq.s32.totalorder %s3131_s12, 0 }
  0x11   : > { %s3133_s18 = sadd.s32 4294967295, %s4340_s9  ;;  %s3134_s19 = sadd.s32 4294967295, %s5417_s14 }
  0x12   : > { %s5421_s15 = smov (%p37_p5, %s5419_s15), 0  ;;  %p4470_p7 = por %p56_p6, %p55_p4 }
  0x13   : > { %5391 = sst [smem:[#allocation12_spill]] %s5421_s15  ;;  %p192_p8 = scmp.gt.s32.totalorder %s3133_s18, 0 }
  0x14   : > { %s39_s21 = ssub.s32 %s4344_s10, %s5421_s15  ;;  %p195_p9 = scmp.gt.s32.totalorder %s3134_s19, 0 }
  0x15   : > { %p40_p10 = scmp.eq.s32.totalorder %s39_s21, 0  ;;  %s202_s22 = sadd.s32 1, %s4316_s26 }
  0x16   : > { %s5423_s18 = smov (!%p192_p8, %s3133_s18), 0  ;;  %s5425_s19 = smov (!%p195_p9, %s3134_s19), 0 }
  0x17   : > { %s4478_s23 = scalar_select %p40_p10, %s4328_s29, %s42_s16  }
  0x18   : > { %p212_p11 = scmp.ne.s32.totalorder %s4316_s26, %s4312_s25  ;;  %p213_p12 = scmp.eq.s32.totalorder %s3131_s12, 5 }
  0x19   : > { %5393 = sst [smem:[#allocation13_spill]] %s4478_s23  ;;  %s198_s27 = ssub.s32 %s5423_s18, %s5425_s19 }
  0x1a   : > { %p218_p13 = scmp.ne.s32.totalorder %s4312_s25, %s4308_s24  ;;  %s199_s13 = sor.u32 %s198_s27, %s39_s21 }
  0x1b   : > { %p4484_p0 = por %p213_p12, %p212_p11  ;;  %p200_p1 = scmp.eq.s32.totalorder %s199_s13, 0 }
  0x1c   : > { %s5395_s15 = sadd.s32 4294967294, %s4348_s11   ;;  %p4101_p4 = scmp.lt.s32.totalorder %s4348_s11, 6 }
  0x1d   : > { %s5394_s14 = scalar_select %p4484_p0, 1, 0 }
  0x1e   : > { %p219_p2 = scmp.eq.s32.totalorder %s5395_s15, 5  ;;  %s257_s12 = sand.u32 1, %s4328_s29  }
  0x1f   : > { %s4492_s9 = scalar_select %p200_p1, %s4316_s26, %s202_s22  }
  0x20   : > { %p4494_p5 = por %p219_p2, %p218_p13  ;;  %s3137_s18 = sshll.u32 %s257_s12, 8 }
  0x21   : > { %s3475_s19 = sshll.u32 %s4344_s10, 12  ;;  %s261_s13 = scalar_lea.vmem [#allocation3], %s3137_s18 }
  0x22   : > { %s5396_s16 = scalar_select %p4494_p5, 1, 0 }
  0x23   : > { %s4503_s21 = scalar_lea.hbm %s5373_s0, %s3475_s19  ;;  %s268_s15 = sshll.u32 %s261_s13, 4  ;;  %s4505_s15 = int_to_ptr.vmem [resolvable:$true] %s268_s15 }
  0x24   : > { %p4509_p6 = pnand %p4101_p4, %p4461_p3  ;;  %s4514_s27 = scalar_lea.sflag [#allocation4], %s257_s12 }
  0x25   : > { %s4196_s24 = scalar_lea.hbm %s4503_s21, 4096  ;;  %s4201_s17 = scalar_lea.hbm %s5373_s0, 8192 }
  0x26   : > { %p4197_p9 = scmp.ne.s32.totalorder %s4503_s21, %s4196_s24  ;;  %p4198_p10 = pneg %p4509_p6 }
  0x27   : > { %p4202_p3 = scmp.lt.u32.totalorder %s4503_s21, %s5373_s0  ;;  %p4203_p13 = scmp.lt.u32.totalorder %s4201_s17, %s4196_s24 }
  0x28   : > { %p4199_p11 = pnand %p4198_p10, %p4197_p9  ;;  %p4205_p2 = scmp.lt.u32.totalorder %s4196_s24, %s4503_s21 }
  0x29   : > { %p4204_p1 = por %p4203_p13, %p4202_p3 }
  0x2a   : > { %p4200_p12 = pneg %p4199_p11 }
  0x2b   : > { %p4206_p4 = por %p4205_p2, %p4204_p1 }
  0x2d   : > { %p4207_p8 = pnand %p4206_p4, %p4200_p12 }
  0x2f   : > { %4210 = shalt.err (!%p4207_p8)
}
  0x30   : > { %s4211_s12 = scalar_lea.vmem %s4505_s15, 4096  ;;  %s4350_s23 = smov [#allocation3]  }
  0x31   : > { %p4212_p9 = scmp.ne.s32.totalorder %s4505_s15, %s4211_s12  ;;  %s4216_s18 = sshll.u32 %s4350_s23, 4  ;;  %s4217_s18 = int_to_ptr.vmem [resolvable:$false] %s4216_s18 }
  0x32   : > { %s4218_s19 = scalar_lea.vmem %s4217_s18, 8192  ;;  %p4219_p0 = scmp.lt.s32.totalorder %s4505_s15, %s4217_s18 }
  0x33   : > { %p4214_p11 = pnand %p4212_p9, %p4198_p10  ;;  %p4220_p3 = scmp.lt.s32.totalorder %s4218_s19, %s4211_s12 }
  0x35   : > { %p4215_p5 = pneg %p4214_p11  ;;  %p4221_p13 = por %p4220_p3, %p4219_p0 }
  0x37   : > { %p4222_p1 = pnand %p4221_p13, %p4215_p5 }
  0x39   : > { %4225 = shalt.err (!%p4222_p1)
}
  0x3a   : > { %s4351_s24 = smov 128   ;;  %s4352_s17 = smov 8  }
  0x3b   : > { %4096 = dma.hbm_to_vmem [thread:$0]  (!%p4509_p6), %s4503_s21, 4096, %s4505_s15, %s4514_s27, %s4351_s24, %s4351_s24, %s4352_s17  }
  0x3c   : > { %p276_p8 = scmp.lt.s32.totalorder %s4348_s11, 7  ;;  %p5398_p10 = scmp.ge.s32.totalorder %s4348_s11, 1 }
  0x3e   : > { %p277_p12 = pnand %p5398_p10, %p276_p8 }
  0x3f   : > { %s282_s13 = sand.u32 (!%p277_p12), 1, %s4324_s28  }
  0x40   : > { %280 = sbr.rel (%p277_p12) target bundleno = 973 (0x3cd), region = 48  ;;  %s4546_s12 = sshll.u32 (!%p277_p12), %s282_s13, 8 }
  0x41   : > { %s283_s23 = scalar_lea.sflag (!%p277_p12), [#allocation4], %s282_s13  ;;  %s286_s18 = scalar_lea.vmem (!%p277_p12), [#allocation3], %s4546_s12 }
  0x47   : > { %4299 = dma.done.wait (%p4470_p7), %s283_s23, 4096  }
  0x48   : > { %4301 = vsyncadd (%p4470_p7), %s283_s23, 4294963200  ;;  %s5386_s21 = sand.u32 1, %s4312_s25   ;;  %p3143_p0 = scmp.ne.s32.totalorder %s4332_s30, 0 }
  0x49   : > { %s3142_s15 = sshll.u32 %s5386_s21, 7  ;;  %vm325_vm0 = vcmask (!%p3143_p0), 31744   ;;  %vm328_vm1 = vcmask (!%p3143_p0), 25600   ;;  %v4353_v0 = vmov (!%p3143_p0), 0.0  }
  0x4a   : > { %s4556_s22 = scalar_lea.vmem [#allocation6], %s3142_s15  ;;  %324 = sbr.rel (%p3143_p0) target bundleno = 101 (0x65), region = 56  ;;  %326 = vst.msk [vmem:[#allocation2] sm:$0xff] (!%p3143_p0), %vm325_vm0, %v4353_v0  ;;  %327 = vst.msk [vmem:[#allocation2 + $0x8] sm:$0xff] (!%p3143_p0), %vm325_vm0, %v4353_v0 }
  0x4b   : > { %330 = vst.msk [vmem:[#allocation2 + $0x18] sm:$0xff] (!%p3143_p0), %vm325_vm0, %v4353_v0  ;;  %331 = vst.msk [vmem:[#allocation2 + $0x20] sm:$0xff] (!%p3143_p0), %vm325_vm0, %v4353_v0 }
  0x4c   : > { %333 = vst.msk [vmem:[#allocation2 + $0x30] sm:$0xff] (!%p3143_p0), %vm325_vm0, %v4353_v0  ;;  %334 = vst.msk [vmem:[#allocation2 + $0x38] sm:$0xff] (!%p3143_p0), %vm325_vm0, %v4353_v0 }
  0x4d   : > { %336 = vst.msk [vmem:[#allocation2 + $0x48] sm:$0xff] (!%p3143_p0), %vm325_vm0, %v4353_v0  ;;  %337 = vst.msk [vmem:[#allocation2 + $0x50] sm:$0xff] (!%p3143_p0), %vm325_vm0, %v4353_v0 }
  0x4e   : > { %339 = vst.msk [vmem:[#allocation2 + $0x60] sm:$0xff] (!%p3143_p0), %vm325_vm0, %v4353_v0  ;;  %340 = vst.msk [vmem:[#allocation2 + $0x68] sm:$0xff] (!%p3143_p0), %vm325_vm0, %v4353_v0 }
  0x4f   : > { %342 = vst.msk [vmem:[#allocation2 + $0x78] sm:$0xff] (!%p3143_p0), %vm325_vm0, %v4353_v0  ;;  %343 = vst.msk [vmem:[#allocation2 + $0x80] sm:$0xff] (!%p3143_p0), %vm325_vm0, %v4353_v0 }
  0x50   : > { %345 = vst.msk [vmem:[#allocation2 + $0x90] sm:$0xff] (!%p3143_p0), %vm325_vm0, %v4353_v0  ;;  %346 = vst.msk [vmem:[#allocation2 + $0x98] sm:$0xff] (!%p3143_p0), %vm325_vm0, %v4353_v0 }
  0x51   : > { %348 = vst.msk [vmem:[#allocation2 + $0xa8] sm:$0xff] %vm325_vm0, %v4353_v0  ;;  %349 = vst.msk [vmem:[#allocation2 + $0xb0] sm:$0xff] %vm325_vm0, %v4353_v0 }
  0x52   : > { %351 = vst.msk [vmem:[#allocation2 + $0xc0] sm:$0xff] %vm325_vm0, %v4353_v0  ;;  %352 = vst.msk [vmem:[#allocation2 + $0xc8] sm:$0xff] %vm325_vm0, %v4353_v0 }
  0x53   : > { %354 = vst.msk [vmem:[#allocation2 + $0xd8] sm:$0xff] %vm325_vm0, %v4353_v0  ;;  %355 = vst.msk [vmem:[#allocation2 + $0xe0] sm:$0xff] %vm325_vm0, %v4353_v0 }
  0x54   : > { %357 = vst.msk [vmem:[#allocation2 + $0xf0] sm:$0xff] %vm325_vm0, %v4353_v0  ;;  %358 = vst.msk [vmem:[#allocation2 + $0xf8] sm:$0xff] %vm325_vm0, %v4353_v0 }
  0x55   : > { %360 = vst.msk [vmem:[#allocation2 + $0x108] sm:$0xff] %vm325_vm0, %v4353_v0  ;;  %361 = vst.msk [vmem:[#allocation2 + $0x110] sm:$0xff] %vm325_vm0, %v4353_v0 }
  0x56   : > { %363 = vst.msk [vmem:[#allocation2 + $0x120] sm:$0xff] %vm325_vm0, %v4353_v0  ;;  %364 = vst.msk [vmem:[#allocation2 + $0x128] sm:$0xff] %vm325_vm0, %v4353_v0 }
  0x57   : > { %366 = vst.msk [vmem:[#allocation2 + $0x138] sm:$0xff] %vm325_vm0, %v4353_v0  ;;  %367 = vst.msk [vmem:[#allocation2 + $0x140] sm:$0xff] %vm325_vm0, %v4353_v0 }
  0x58   : > { %369 = vst.msk [vmem:[#allocation2 + $0x150] sm:$0xff] %vm325_vm0, %v4353_v0  ;;  %370 = vst.msk [vmem:[#allocation2 + $0x158] sm:$0xff] %vm325_vm0, %v4353_v0 }
  0x59   : > { %372 = vst.msk [vmem:[#allocation2 + $0x168] sm:$0xff] %vm325_vm0, %v4353_v0  ;;  %373 = vst.msk [vmem:[#allocation2 + $0x170] sm:$0xff] %vm325_vm0, %v4353_v0 }
  0x5a   : > { %375 = vst.msk [vmem:[#allocation2 + $0x180] sm:$0xff] %vm325_vm0, %v4353_v0  ;;  %376 = vst.msk [vmem:[#allocation2 + $0x188] sm:$0xff] %vm325_vm0, %v4353_v0 }
  0x5b   : > { %378 = vst.msk [vmem:[#allocation2 + $0x198] sm:$0xff] %vm325_vm0, %v4353_v0  ;;  %379 = vst.msk [vmem:[#allocation2 + $0x1a0] sm:$0xff] %vm325_vm0, %v4353_v0 }
  0x5c   : > { %329 = vst.msk [vmem:[#allocation2 + $0x10] sm:$0x3] %vm328_vm1, %v4353_v0  ;;  %332 = vst.msk [vmem:[#allocation2 + $0x28] sm:$0x3] %vm328_vm1, %v4353_v0 }
  0x5d   : > { %335 = vst.msk [vmem:[#allocation2 + $0x40] sm:$0x3] %vm328_vm1, %v4353_v0  ;;  %338 = vst.msk [vmem:[#allocation2 + $0x58] sm:$0x3] %vm328_vm1, %v4353_v0 }
  0x5e   : > { %341 = vst.msk [vmem:[#allocation2 + $0x70] sm:$0x3] %vm328_vm1, %v4353_v0  ;;  %344 = vst.msk [vmem:[#allocation2 + $0x88] sm:$0x3] %vm328_vm1, %v4353_v0 }
  0x5f   : > { %347 = vst.msk [vmem:[#allocation2 + $0xa0] sm:$0x3] %vm328_vm1, %v4353_v0  ;;  %350 = vst.msk [vmem:[#allocation2 + $0xb8] sm:$0x3] %vm328_vm1, %v4353_v0 }
  0x60   : > { %353 = vst.msk [vmem:[#allocation2 + $0xd0] sm:$0x3] %vm328_vm1, %v4353_v0  ;;  %356 = vst.msk [vmem:[#allocation2 + $0xe8] sm:$0x3] %vm328_vm1, %v4353_v0 }
  0x61   : > { %359 = vst.msk [vmem:[#allocation2 + $0x100] sm:$0x3] %vm328_vm1, %v4353_v0  ;;  %362 = vst.msk [vmem:[#allocation2 + $0x118] sm:$0x3] %vm328_vm1, %v4353_v0 }
  0x62   : > { %365 = vst.msk [vmem:[#allocation2 + $0x130] sm:$0x3] %vm328_vm1, %v4353_v0  ;;  %368 = vst.msk [vmem:[#allocation2 + $0x148] sm:$0x3] %vm328_vm1, %v4353_v0 }
  0x63   : > { %371 = vst.msk [vmem:[#allocation2 + $0x160] sm:$0x3] %vm328_vm1, %v4353_v0  ;;  %374 = vst.msk [vmem:[#allocation2 + $0x178] sm:$0x3] %vm328_vm1, %v4353_v0 }
  0x64   : > { %377 = vst.msk [vmem:[#allocation2 + $0x190] sm:$0x3] %vm328_vm1, %v4353_v0  ;;  %380 = vst.msk [vmem:[#allocation2 + $0x1a8] sm:$0x3] %vm328_vm1, %v4353_v0 }
  0x65 PF: > { %p3144_p7 = scmp.ge.s32.totalorder %s4332_s30, 2 }
  0x66   : > { %v404_v1 = vld [vmem:[%s5374_s1] sm:$0xff] (!%p3144_p7)  ;;  %v405_v2 = vld [vmem:[%s5374_s1 + $0x8] sm:$0xff] (!%p3144_p7)  ;;  %s3476_s17 = sshll.u32 (!%p3144_p7), %s4332_s30, 7  ;;  %vm413_vm2 = vcmask (!%p3144_p7), 130048   ;;  %s3165_s20 = smul.u32 (!%p3144_p7), 192, %s4332_s30  ;;  %vm626_vm3 = vcmask (!%p3144_p7), 31744  }
  0x67   : > { %384 = sbr.rel (%p3144_p7) target bundleno = 339 (0x153), region = 60  ;;  %v3955_v3 = vpack.c.bf16 (!%p3144_p7), %v405_v2, %v404_v1  ;;  %s4623_s13 = scalar_lea.vmem (!%p3144_p7), %s286_s18, %s3476_s17 [#allocation3]  ;;  %v3147_v20 = vld [vmem:[%s5377_s4] ss:$0 sm:$0xff] (!%p3144_p7) }
  0x68   : > { %v388_v4 = vld [vmem:[%s4623_s13] sm:$0xff] (!%p3144_p7)  ;;  %v389_v6 = vld [vmem:[%s4623_s13 + $0x8] sm:$0xff] (!%p3144_p7)  ;;  %v390_v8 = vld [vmem:[%s4623_s13 + $0x10] sm:$0xff] (!%p3144_p7)  ;;  %s4661_s27 = scalar_lea.vmem (!%p3144_p7), [#allocation2], %s3165_s20 }
  0x69   : > { %v396_v5 = vld [vmem:[%s4623_s13 + $0x40] sm:$0xff] (!%p3144_p7)  ;;  %3956 = vmatprep.subr.bf16.mxu0 (!%p3144_p7), %v3955_v3  ;;  %3959 = vmatprep.subr.bf16.mxu1 (!%p3144_p7), %v3955_v3  ;;  %v397_v7 = vld [vmem:[%s4623_s13 + $0x48] sm:$0xff] (!%p3144_p7)  ;;  %v398_v9 = vld [vmem:[%s4623_s13 + $0x50] sm:$0xff] (!%p3144_p7) }
  0x6a   : > { %3958 = vmatpush3.bf16.msra.mxu0 (!%p3144_p7), %v3955_v3  ;;  %3960 = vmatpush3.bf16.msra.mxu1 (!%p3144_p7), %v3955_v3  ;;  %v391_v10 = vld [vmem:[%s4623_s13 + $0x18] sm:$0xff] (!%p3144_p7)  ;;  %v392_v12 = vld [vmem:[%s4623_s13 + $0x20] sm:$0xff] (!%p3144_p7)  ;;  %v393_v14 = vld [vmem:[%s4623_s13 + $0x28] sm:$0xff] (!%p3144_p7) }
  0x6b   : > { %3671 = vmatprep.mubr.msk.f32.mxu0 (!%p3144_p7), %vm413_vm2, %v388_v4  ;;  %3683 = vmatprep.mubr.msk.f32.mxu1 (!%p3144_p7), %vm413_vm2, %v396_v5  ;;  %v399_v11 = vld [vmem:[%s4623_s13 + $0x58] sm:$0xff] (!%p3144_p7)  ;;  %v400_v13 = vld [vmem:[%s4623_s13 + $0x60] sm:$0xff] (!%p3144_p7)  ;;  %v401_v15 = vld [vmem:[%s4623_s13 + $0x68] sm:$0xff] (!%p3144_p7) }
  0x6c   : > { %v394_v16 = vld [vmem:[%s4623_s13 + $0x30] sm:$0xff] (!%p3144_p7)  ;;  %v395_v18 = vld [vmem:[%s4623_s13 + $0x38] sm:$0xff] (!%p3144_p7) }
  0x6d   : > { %3672 = vmatmul.mubr.msk.f32.vlgmr.msra.gmra.mrb[0].mxu0 (!%p3144_p7), %vm413_vm2, %v389_v6  ;;  %3684 = vmatmul.mubr.msk.f32.vlgmr.msra.gmra.mrb[0].mxu1 (!%p3144_p7), %vm413_vm2, %v397_v7  ;;  %v402_v17 = vld [vmem:[%s4623_s13 + $0x70] sm:$0xff] (!%p3144_p7)  ;;  %v403_v19 = vld [vmem:[%s4623_s13 + $0x78] sm:$0xff] (!%p3144_p7) }
  0x6e   : > { %3674 = vmatprep.mubr.msk.f32.mxu0 %vm413_vm2, %v390_v8  ;;  %3686 = vmatprep.mubr.msk.f32.mxu1 %vm413_vm2, %v398_v9 }
  0x71   : > { %3675 = vmatmul.mubr.msk.f32.gmra.mrb[2].mxu0 %vm413_vm2, %v391_v10  ;;  %3687 = vmatmul.mubr.msk.f32.gmra.mrb[2].mxu1 %vm413_vm2, %v399_v11 }
  0x72   : > { %3677 = vmatprep.mubr.msk.f32.mxu0 %vm413_vm2, %v392_v12  ;;  %3689 = vmatprep.mubr.msk.f32.mxu1 %vm413_vm2, %v400_v13 }
  0x75   : > { %3678 = vmatmul.mubr.msk.f32.gmra.mrb[4].mxu0 %vm413_vm2, %v393_v14  ;;  %3690 = vmatmul.mubr.msk.f32.gmra.mrb[4].mxu1 %vm413_vm2, %v401_v15 }
  0x76   : > { %3680 = vmatprep.mubr.msk.f32.mxu0 %vm413_vm2, %v394_v16  ;;  %3692 = vmatprep.mubr.msk.f32.mxu1 %vm413_vm2, %v402_v17 }
  0x79   : > { %3681 = vmatmul.mubr.msk.f32.gmra.mrb[6].mxu0 %vm413_vm2, %v395_v18  ;;  %3693 = vmatmul.mubr.msk.f32.gmra.mrb[6].mxu1 %vm413_vm2, %v403_v19 }
 0x140   : > { %v3673_v21 = vpop.f32.mrb[0].mxu0  ;;  %v3685_v22 = vpop.f32.mrb[0].mxu1 }
 0x141   : > { %v534_v23 = vadd.f32 %v3673_v21, %v3147_v20  ;;  %v574_v24 = vadd.f32 %v3685_v22, %v3147_v20  ;;  %v528_v25 = vpop.f32.mrb[1].mxu0  ;;  %v568_v26 = vpop.f32.mrb[1].mxu1 }
 0x142   : > { %v529_v27 = vadd.f32 %v3147_v20, %v528_v25  ;;  %v569_v28 = vadd.f32 %v3147_v20, %v568_v26 }
 0x143   : > { %v608_v29 = vmax.f32 %v534_v23, 0.0  ;;  %v616_v30 = vmax.f32 %v574_v24, 0.0 }
 0x144   : > { %v607_v31 = vmax.f32 %v529_v27, 0.0  ;;  %v615_v32 = vmax.f32 %v569_v28, 0.0  ;;  %v3676_v33 = vpop.f32.mrb[2].mxu0  ;;  %v3688_v34 = vpop.f32.mrb[2].mxu1 }
 0x145   : > { %3167 = vst.msk [vmem:[%s4661_s27 + $0x21] sm:$0xff] %vm626_vm3, %v608_v29  ;;  %3175 = vst.msk [vmem:[%s4661_s27 + $0x81] sm:$0xff] %vm626_vm3, %v616_v30  ;;  %v544_v35 = vadd.f32 %v3676_v33, %v3147_v20  ;;  %v584_v36 = vadd.f32 %v3688_v34, %v3147_v20  ;;  %v538_v37 = vpop.f32.mrb[3].mxu0  ;;  %v578_v38 = vpop.f32.mrb[3].mxu1 }
 0x146   : > { %3166 = vst.msk [vmem:[%s4661_s27 + $0x19] sm:$0xff] %vm626_vm3, %v607_v31  ;;  %3174 = vst.msk [vmem:[%s4661_s27 + $0x79] sm:$0xff] %vm626_vm3, %v615_v32  ;;  %v539_v39 = vadd.f32 %v3147_v20, %v538_v37  ;;  %v579_v40 = vadd.f32 %v3147_v20, %v578_v38 }
 0x147   : > { %v610_v41 = vmax.f32 %v544_v35, 0.0  ;;  %v618_v42 = vmax.f32 %v584_v36, 0.0 }
 0x148   : > { %v609_v43 = vmax.f32 %v539_v39, 0.0  ;;  %v617_v44 = vmax.f32 %v579_v40, 0.0  ;;  %v3679_v45 = vpop.f32.mrb[4].mxu0  ;;  %v3691_v46 = vpop.f32.mrb[4].mxu1 }
 0x149   : > { %3169 = vst.msk [vmem:[%s4661_s27 + $0x39] sm:$0xff] %vm626_vm3, %v610_v41  ;;  %3177 = vst.msk [vmem:[%s4661_s27 + $0x99] sm:$0xff] %vm626_vm3, %v618_v42  ;;  %v554_v47 = vadd.f32 %v3679_v45, %v3147_v20  ;;  %v594_v48 = vadd.f32 %v3691_v46, %v3147_v20  ;;  %v548_v49 = vpop.f32.mrb[5].mxu0  ;;  %v588_v50 = vpop.f32.mrb[5].mxu1 }
 0x14a   : > { %3168 = vst.msk [vmem:[%s4661_s27 + $0x31] sm:$0xff] %vm626_vm3, %v609_v43  ;;  %3176 = vst.msk [vmem:[%s4661_s27 + $0x91] sm:$0xff] %vm626_vm3, %v617_v44  ;;  %v549_v51 = vadd.f32 %v3147_v20, %v548_v49  ;;  %v589_v52 = vadd.f32 %v3147_v20, %v588_v50 }
 0x14b   : > { %v612_v53 = vmax.f32 %v554_v47, 0.0  ;;  %v620_v54 = vmax.f32 %v594_v48, 0.0 }
 0x14c   : > { %v611_v55 = vmax.f32 %v549_v51, 0.0  ;;  %v619_v56 = vmax.f32 %v589_v52, 0.0  ;;  %v3682_v57 = vpop.f32.mrb[6].mxu0  ;;  %v3694_v58 = vpop.f32.mrb[6].mxu1 }
 0x14d   : > { %3171 = vst.msk [vmem:[%s4661_s27 + $0x51] sm:$0xff] %vm626_vm3, %v612_v53  ;;  %3179 = vst.msk [vmem:[%s4661_s27 + $0xb1] sm:$0xff] %vm626_vm3, %v620_v54  ;;  %v564_v59 = vadd.f32 %v3682_v57, %v3147_v20  ;;  %v604_v60 = vadd.f32 %v3694_v58, %v3147_v20  ;;  %v558_v61 = vpop.f32.mrb[7].mxu0  ;;  %v598_v62 = vpop.f32.mrb[7].mxu1 }
 0x14e   : > { %3170 = vst.msk [vmem:[%s4661_s27 + $0x49] sm:$0xff] %vm626_vm3, %v611_v55  ;;  %3178 = vst.msk [vmem:[%s4661_s27 + $0xa9] sm:$0xff] %vm626_vm3, %v619_v56  ;;  %v559_v63 = vadd.f32 %v3147_v20, %v558_v61  ;;  %v599_v0 = vadd.f32 %v3147_v20, %v598_v62 }
 0x14f   : > { %v614_v1 = vmax.f32 %v564_v59, 0.0  ;;  %v622_v2 = vmax.f32 %v604_v60, 0.0 }
 0x150   : > { %v613_v3 = vmax.f32 %v559_v63, 0.0  ;;  %v621_v4 = vmax.f32 %v599_v0, 0.0 }
 0x151   : > { %3173 = vst.msk [vmem:[%s4661_s27 + $0x69] sm:$0xff] %vm626_vm3, %v614_v1  ;;  %3181 = vst.msk [vmem:[%s4661_s27 + $0xc9] sm:$0xff] %vm626_vm3, %v622_v2 }
 0x152   : > { %3172 = vst.msk [vmem:[%s4661_s27 + $0x61] sm:$0xff] %vm626_vm3, %v613_v3  ;;  %3180 = vst.msk [vmem:[%s4661_s27 + $0xc1] sm:$0xff] %vm626_vm3, %v621_v4 }
 0x153 PF: > { %p3182_p5 = scmp.lt.s32.totalorder %s4332_s30, 1 }
 0x154   : > { %vm735_vm4 = vcmask (!%p3182_p5), 1043456   ;;  %v3291_v5 = vld [vmem:[%s5375_s2 + $0x10] sm:$0xf] (!%p3182_p5)  ;;  %v3186_v6 = vld [vmem:[%s5375_s2 + $0x4] sm:$0xf] (!%p3182_p5)  ;;  %s3183_s23 = sadd.s32 (!%p3182_p5), 4294967295, %s4332_s30 }
 0x155   : > { %646 = sbr.rel (%p3182_p5) target bundleno = 943 (0x3af), region = 64  ;;  %3799 = vmatprep.subr.msk.mxu0 (!%p3182_p5), %vm735_vm4, %v3291_v5  ;;  %3695 = vmatprep.subr.msk.mxu1 (!%p3182_p5), %vm735_vm4, %v3186_v6  ;;  %v3325_v7 = vld [vmem:[%s5375_s2 + $0x14] sm:$0xf] (!%p3182_p5)  ;;  %v667_v8 = vld [vmem:[%s5375_s2] sm:$0xf] (!%p3182_p5)  ;;  %vm686_vm5 = vcmask (!%p3182_p5), 31744  }
 0x156   : > { %s3185_s15 = smul.u32 (!%p3182_p5), 192, %s3183_s23  ;;  %3800 = vmatpush3.msk.msra.mxu0 (!%p3182_p5), %vm735_vm4, %v3291_v5  ;;  %3696 = vmatpush3.msk.msra.mxu1 (!%p3182_p5), %vm735_vm4, %v3186_v6  ;;  %v3361_v14 = vld [vmem:[%s5375_s2 + $0x18] sm:$0xf] (!%p3182_p5)  ;;  %v4736_v15 = vld [vmem:[%s5375_s2 + $0x8] sm:$0xf] (!%p3182_p5)  ;;  %s3477_s19 = sshll.u32 (!%p3182_p5), %s3183_s23, 7 }
 0x157   : > { %3825 = vmatprep.subr.msk.mxu0 (!%p3182_p5), %vm735_vm4, %v3325_v7  ;;  %3721 = vmatprep.subr.msk.mxu1 (!%p3182_p5), %vm735_vm4, %v667_v8  ;;  %v4859_v35 = vld [vmem:[%s5375_s2 + $0x1c] sm:$0xf] (!%p3182_p5)  ;;  %v4864_v36 = vld [vmem:[%s5375_s2 + $0xc] sm:$0xf] (!%p3182_p5)  ;;  %v3429_v1 = vld [vmem:[%s5375_s2 + $0x20] sm:$0xf] (!%p3182_p5)  ;;  %s5229_s21 = scalar_lea.vmem (!%p3182_p5), %s286_s18, %s3477_s19 [#allocation3] }
 0x158   : > { %s4717_s24 = scalar_lea.vmem (!%p3182_p5), [#allocation2], %s3185_s15  ;;  %vm2989_vm6 = vcmask (!%p3182_p5), 130048  }
 0x159   : > { %v668_v9 = vld [vmem:[%s4717_s24 + $0x1] sm:$0xff] (!%p3182_p5)  ;;  %v3275_v10 = vld [vmem:[%s4717_s24 + $0x19] sm:$0xff] (!%p3182_p5)  ;;  %v669_v11 = vld [vmem:[%s4717_s24 + $0x9] sm:$0xff] (!%p3182_p5) }
 0x15a   : > { %3697 = vmatprep.mubr.msk.f32.mxu1 (!%p3182_p5), %vm686_vm5, %v668_v9  ;;  %3801 = vmatprep.mubr.msk.f32.mxu0 (!%p3182_p5), %vm686_vm5, %v3275_v10  ;;  %v3276_v12 = vld [vmem:[%s4717_s24 + $0x21] sm:$0xff] (!%p3182_p5)  ;;  %v4726_v13 = vld [vmem:[%s4717_s24 + $0x31] sm:$0xff] (!%p3182_p5)  ;;  %v4741_v16 = vld [vmem:[%s4717_s24 + $0x39] sm:$0xff] (!%p3182_p5) }
 0x15b   : > { %3698 = vmatmul.mubr.msk.f32.vlgmr.msra.gmra.mrb[0].mxu1 (!%p3182_p5), %vm686_vm5, %v669_v11  ;;  %3802 = vmatmul.mubr.msk.f32.vlgmr.msra.gmra.mrb[0].mxu0 (!%p3182_p5), %vm686_vm5, %v3276_v12  ;;  %v4746_v17 = vld [vmem:[%s4717_s24 + $0x49] sm:$0xff] (!%p3182_p5)  ;;  %v4760_v18 = vld [vmem:[%s4717_s24 + $0x51] sm:$0xff] (!%p3182_p5)  ;;  %v4763_v19 = vld [vmem:[%s4717_s24 + $0x61] sm:$0xff] (!%p3182_p5) }
 0x15c   : > { %3826 = vmatpush3.msk.msra.mxu0 %vm735_vm4, %v3325_v7  ;;  %3700 = vmatprep.mubr.msk.f32.mxu1 %vm686_vm5, %v3275_v10  ;;  %v4774_v20 = vld [vmem:[%s4717_s24 + $0x69] sm:$0xff]  ;;  %v4777_v21 = vld [vmem:[%s4717_s24 + $0x79] sm:$0xff]  ;;  %v4788_v22 = vld [vmem:[%s4717_s24 + $0x81] sm:$0xff] }
 0x15d   : > { %3804 = vmatprep.mubr.msk.f32.mxu0 %vm686_vm5, %v4726_v13  ;;  %3722 = vmatpush3.msk.msra.mxu1 %vm735_vm4, %v667_v8  ;;  %v4791_v23 = vld [vmem:[%s4717_s24 + $0x91] sm:$0xff]  ;;  %v4802_v24 = vld [vmem:[%s4717_s24 + $0x99] sm:$0xff]  ;;  %v4805_v25 = vld [vmem:[%s4717_s24 + $0xa9] sm:$0xff] }
 0x15e   : > { %3851 = vmatprep.subr.msk.mxu0 %vm735_vm4, %v3361_v14  ;;  %3747 = vmatprep.subr.msk.mxu1 %vm735_vm4, %v4736_v15  ;;  %v4816_v26 = vld [vmem:[%s4717_s24 + $0xb1] sm:$0xff]  ;;  %v4819_v27 = vld [vmem:[%s4717_s24 + $0xc1] sm:$0xff]  ;;  %v4830_v28 = vld [vmem:[%s4717_s24 + $0xc9] sm:$0xff] }
 0x15f   : > { %3701 = vmatmul.mubr.msk.f32.gmra.mrb[2].mxu1 %vm686_vm5, %v3276_v12  ;;  %3805 = vmatmul.mubr.msk.f32.gmra.mrb[2].mxu0 %vm686_vm5, %v4741_v16  ;;  %v651_v29 = vld [vmem:[%s4717_s24] sm:$0xff]  ;;  %v652_v31 = vld [vmem:[%s4717_s24 + $0x8] sm:$0xff]  ;;  %v4848_v33 = vld [vmem:[%s4717_s24 + $0x18] sm:$0xff] }
 0x160   : > { %3703 = vmatprep.mubr.msk.f32.mxu1 %vm686_vm5, %v4726_v13  ;;  %3807 = vmatprep.mubr.msk.f32.mxu0 %vm686_vm5, %v4746_v17  ;;  %v4834_v30 = vld [vmem:[%s4717_s24 + $0x1a] sm:$0xff]  ;;  %v4845_v32 = vld [vmem:[%s4717_s24 + $0x22] sm:$0xff]  ;;  %v4851_v34 = vld [vmem:[%s4717_s24 + $0x32] sm:$0xff] }
 0x161   : > { %v4870_v37 = vld [vmem:[%s4717_s24 + $0x20] sm:$0xff]  ;;  %v4878_v39 = vld [vmem:[%s4717_s24 + $0x30] sm:$0xff]  ;;  %v4898_v41 = vld [vmem:[%s4717_s24 + $0x38] sm:$0xff] }
 0x162   : > { %v4873_v38 = vld [vmem:[%s4717_s24 + $0x3a] sm:$0xff]  ;;  %v4881_v40 = vld [vmem:[%s4717_s24 + $0x4a] sm:$0xff]  ;;  %v4901_v42 = vld [vmem:[%s4717_s24 + $0x52] sm:$0xff] }
 0x163   : > { %3704 = vmatmul.mubr.msk.f32.gmra.mrb[4].mxu1 %vm686_vm5, %v4741_v16  ;;  %3808 = vmatmul.mubr.msk.f32.gmra.mrb[4].mxu0 %vm686_vm5, %v4760_v18  ;;  %v4904_v43 = vld [vmem:[%s4717_s24 + $0x48] sm:$0xff]  ;;  %v4918_v45 = vld [vmem:[%s4717_s24 + $0x50] sm:$0xff]  ;;  %v4924_v47 = vld [vmem:[%s4717_s24 + $0x60] sm:$0xff] }
 0x164   : > { %3706 = vmatprep.mubr.msk.f32.mxu1 %vm686_vm5, %v4746_v17  ;;  %3810 = vmatprep.mubr.msk.f32.mxu0 %vm686_vm5, %v4763_v19  ;;  %v4907_v44 = vld [vmem:[%s4717_s24 + $0x62] sm:$0xff]  ;;  %v4921_v46 = vld [vmem:[%s4717_s24 + $0x6a] sm:$0xff]  ;;  %v4927_v48 = vld [vmem:[%s4717_s24 + $0x7a] sm:$0xff] }
 0x165   : > { %v4938_v49 = vld [vmem:[%s4717_s24 + $0x68] sm:$0xff]  ;;  %v4944_v51 = vld [vmem:[%s4717_s24 + $0x78] sm:$0xff]  ;;  %v4958_v53 = vld [vmem:[%s4717_s24 + $0x80] sm:$0xff] }
 0x166   : > { %v4941_v50 = vld [vmem:[%s4717_s24 + $0x82] sm:$0xff]  ;;  %v4947_v52 = vld [vmem:[%s4717_s24 + $0x92] sm:$0xff]  ;;  %v4961_v54 = vld [vmem:[%s4717_s24 + $0x9a] sm:$0xff] }
 0x167   : > { %3707 = vmatmul.mubr.msk.f32.gmra.mrb[6].mxu1 %vm686_vm5, %v4760_v18  ;;  %3811 = vmatmul.mubr.msk.f32.gmra.mrb[6].mxu0 %vm686_vm5, %v4774_v20  ;;  %v4964_v55 = vld [vmem:[%s4717_s24 + $0x90] sm:$0xff]  ;;  %v4978_v57 = vld [vmem:[%s4717_s24 + $0x98] sm:$0xff]  ;;  %v4984_v59 = vld [vmem:[%s4717_s24 + $0xa8] sm:$0xff] }
 0x168   : > { %3709 = vmatprep.mubr.msk.f32.mxu1 %vm686_vm5, %v4763_v19  ;;  %3813 = vmatprep.mubr.msk.f32.mxu0 %vm686_vm5, %v4777_v21  ;;  %v4967_v56 = vld [vmem:[%s4717_s24 + $0xaa] sm:$0xff]  ;;  %v4981_v58 = vld [vmem:[%s4717_s24 + $0xb2] sm:$0xff]  ;;  %v4987_v60 = vld [vmem:[%s4717_s24 + $0xc2] sm:$0xff] }
 0x169   : > { %v4998_v61 = vld [vmem:[%s4717_s24 + $0xb0] sm:$0xff]  ;;  %v1080_v63 = vld [vmem:[%s4717_s24 + $0x2] sm:$0xff]  ;;  %v3359_v4 = vld [vmem:[%s4717_s24 + $0xd8] sm:$0xff] }
 0x16a   : > { %v5001_v62 = vld [vmem:[%s4717_s24 + $0xca] sm:$0xff]  ;;  %v3357_v2 = vld [vmem:[%s4717_s24 + $0xc0] sm:$0xff] }
 0x16b   : > { %3710 = vmatmul.mubr.msk.f32.gmra.mrb[8].mxu1 %vm686_vm5, %v4774_v20  ;;  %3814 = vmatmul.mubr.msk.f32.gmra.mrb[8].mxu0 %vm686_vm5, %v4788_v22  ;;  %v1081_v0 = vld [vmem:[%s4717_s24 + $0xa] sm:$0xff]  ;;  %v3360_v5 = vld [vmem:[%s4717_s24 + $0xe0] sm:$0xff] }
 0x16c   : > { %3712 = vmatprep.mubr.msk.f32.mxu1 %vm686_vm5, %v4777_v21  ;;  %3816 = vmatprep.mubr.msk.f32.mxu0 %vm686_vm5, %v4791_v23  ;;  %v3358_v3 = vld [vmem:[%s4717_s24 + $0xc8] sm:$0xff]  ;;  %v3393_v6 = vld [vmem:[%s4717_s24 + $0xd9] sm:$0xff] }
 0x16d   : > { %v3394_v7 = vld [vmem:[%s4717_s24 + $0xe1] sm:$0xff] }
 0x16e   : > { %v3427_v8 = vld [vmem:[%s4717_s24 + $0xda] sm:$0xff]  ;;  %v3428_v9 = vld [vmem:[%s4717_s24 + $0xe2] sm:$0xff] }
 0x16f   : > { %3713 = vmatmul.mubr.msk.f32.gmra.mrb[10].mxu1 %vm686_vm5, %v4788_v22  ;;  %3817 = vmatmul.mubr.msk.f32.gmra.mrb[10].mxu0 %vm686_vm5, %v4802_v24  ;;  %v2735_v10 = vld [vmem:[%s5376_s3] sm:$0xf] }
 0x170   : > { %3715 = vmatprep.mubr.msk.f32.mxu1 %vm686_vm5, %v4791_v23  ;;  %3819 = vmatprep.mubr.msk.f32.mxu0 %vm686_vm5, %v4805_v25 }
 0x173   : > { %3716 = vmatmul.mubr.msk.f32.gmra.mrb[12].mxu1 %vm686_vm5, %v4802_v24  ;;  %3820 = vmatmul.mubr.msk.f32.gmra.mrb[12].mxu0 %vm686_vm5, %v4816_v26 }
 0x174   : > { %3718 = vmatprep.mubr.msk.f32.mxu1 %vm686_vm5, %v4805_v25  ;;  %3822 = vmatprep.mubr.msk.f32.mxu0 %vm686_vm5, %v4819_v27 }
 0x177   : > { %3719 = vmatmul.mubr.msk.f32.gmra.mrb[14].mxu1 %vm686_vm5, %v4816_v26  ;;  %3823 = vmatmul.mubr.msk.f32.gmra.mrb[14].mxu0 %vm686_vm5, %v4830_v28 }
 0x178   : > { %3723 = vmatprep.mubr.msk.f32.mxu1 %vm686_vm5, %v651_v29  ;;  %3827 = vmatprep.mubr.msk.f32.mxu0 %vm686_vm5, %v4834_v30 }
 0x17b   : > { %3724 = vmatmul.mubr.msk.f32.vlgmr.msra.gmra.mrb[0].mxu1 %vm686_vm5, %v652_v31  ;;  %3828 = vmatmul.mubr.msk.f32.vlgmr.msra.gmra.mrb[0].mxu0 %vm686_vm5, %v4845_v32 }
 0x17c   : > { %3852 = vmatpush3.msk.msra.mxu0 %vm735_vm4, %v3361_v14  ;;  %3726 = vmatprep.mubr.msk.f32.mxu1 %vm686_vm5, %v4848_v33 }
 0x17d   : > { %3830 = vmatprep.mubr.msk.f32.mxu0 %vm686_vm5, %v4851_v34  ;;  %3748 = vmatpush3.msk.msra.mxu1 %vm735_vm4, %v4736_v15 }
 0x17e   : > { %3877 = vmatprep.subr.msk.mxu0 %vm735_vm4, %v4859_v35  ;;  %3773 = vmatprep.subr.msk.mxu1 %vm735_vm4, %v4864_v36 }
 0x17f   : > { %3727 = vmatmul.mubr.msk.f32.gmra.mrb[2].mxu1 %vm686_vm5, %v4870_v37  ;;  %3831 = vmatmul.mubr.msk.f32.gmra.mrb[2].mxu0 %vm686_vm5, %v4873_v38 }
 0x180   : > { %3729 = vmatprep.mubr.msk.f32.mxu1 %vm686_vm5, %v4878_v39  ;;  %3833 = vmatprep.mubr.msk.f32.mxu0 %vm686_vm5, %v4881_v40 }
 0x183   : > { %3730 = vmatmul.mubr.msk.f32.gmra.mrb[4].mxu1 %vm686_vm5, %v4898_v41  ;;  %3834 = vmatmul.mubr.msk.f32.gmra.mrb[4].mxu0 %vm686_vm5, %v4901_v42 }
 0x184   : > { %3732 = vmatprep.mubr.msk.f32.mxu1 %vm686_vm5, %v4904_v43  ;;  %3836 = vmatprep.mubr.msk.f32.mxu0 %vm686_vm5, %v4907_v44 }
 0x187   : > { %3733 = vmatmul.mubr.msk.f32.gmra.mrb[6].mxu1 %vm686_vm5, %v4918_v45  ;;  %3837 = vmatmul.mubr.msk.f32.gmra.mrb[6].mxu0 %vm686_vm5, %v4921_v46 }
 0x188   : > { %3735 = vmatprep.mubr.msk.f32.mxu1 %vm686_vm5, %v4924_v47  ;;  %3839 = vmatprep.mubr.msk.f32.mxu0 %vm686_vm5, %v4927_v48 }
 0x18b   : > { %3736 = vmatmul.mubr.msk.f32.gmra.mrb[8].mxu1 %vm686_vm5, %v4938_v49  ;;  %3840 = vmatmul.mubr.msk.f32.gmra.mrb[8].mxu0 %vm686_vm5, %v4941_v50 }
 0x18c   : > { %3738 = vmatprep.mubr.msk.f32.mxu1 %vm686_vm5, %v4944_v51  ;;  %3842 = vmatprep.mubr.msk.f32.mxu0 %vm686_vm5, %v4947_v52 }
 0x18f   : > { %3739 = vmatmul.mubr.msk.f32.gmra.mrb[10].mxu1 %vm686_vm5, %v4958_v53  ;;  %3843 = vmatmul.mubr.msk.f32.gmra.mrb[10].mxu0 %vm686_vm5, %v4961_v54 }
 0x190   : > { %3741 = vmatprep.mubr.msk.f32.mxu1 %vm686_vm5, %v4964_v55  ;;  %3845 = vmatprep.mubr.msk.f32.mxu0 %vm686_vm5, %v4967_v56 }
 0x193   : > { %3742 = vmatmul.mubr.msk.f32.gmra.mrb[12].mxu1 %vm686_vm5, %v4978_v57  ;;  %3846 = vmatmul.mubr.msk.f32.gmra.mrb[12].mxu0 %vm686_vm5, %v4981_v58 }
 0x194   : > { %3744 = vmatprep.mubr.msk.f32.mxu1 %vm686_vm5, %v4984_v59  ;;  %3848 = vmatprep.mubr.msk.f32.mxu0 %vm686_vm5, %v4987_v60 }
 0x197   : > { %3745 = vmatmul.mubr.msk.f32.gmra.mrb[14].mxu1 %vm686_vm5, %v4998_v61  ;;  %3849 = vmatmul.mubr.msk.f32.gmra.mrb[14].mxu0 %vm686_vm5, %v5001_v62 }
 0x198   : > { %3749 = vmatprep.mubr.msk.f32.mxu1 %vm686_vm5, %v1080_v63  ;;  %3853 = vmatprep.mubr.msk.f32.mxu0 %vm686_vm5, %v4878_v39 }
 0x19b   : > { %3750 = vmatmul.mubr.msk.f32.vlgmr.msra.gmra.mrb[0].mxu1 %vm686_vm5, %v1081_v0  ;;  %3854 = vmatmul.mubr.msk.f32.vlgmr.msra.gmra.mrb[0].mxu0 %vm686_vm5, %v4898_v41 }
 0x19c   : > { %3878 = vmatpush3.msk.msra.mxu0 %vm735_vm4, %v4859_v35  ;;  %3752 = vmatprep.mubr.msk.f32.mxu1 %vm686_vm5, %v4834_v30 }
 0x19d   : > { %3856 = vmatprep.mubr.msk.f32.mxu0 %vm686_vm5, %v4904_v43  ;;  %3774 = vmatpush3.msk.msra.mxu1 %vm735_vm4, %v4864_v36 }
 0x19e   : > { %3903 = vmatprep.subr.msk.mxu0 %vm735_vm4, %v3429_v1  ;;  %3929 = vmatprep.subr.msk.mxu1 %vm735_vm4, %v2735_v10 }
 0x19f   : > { %3753 = vmatmul.mubr.msk.f32.gmra.mrb[2].mxu1 %vm686_vm5, %v4845_v32  ;;  %3857 = vmatmul.mubr.msk.f32.gmra.mrb[2].mxu0 %vm686_vm5, %v4918_v45 }
 0x1a0   : > { %3755 = vmatprep.mubr.msk.f32.mxu1 %vm686_vm5, %v4851_v34  ;;  %3859 = vmatprep.mubr.msk.f32.mxu0 %vm686_vm5, %v4924_v47 }
 0x1a3   : > { %3756 = vmatmul.mubr.msk.f32.gmra.mrb[4].mxu1 %vm686_vm5, %v4873_v38  ;;  %3860 = vmatmul.mubr.msk.f32.gmra.mrb[4].mxu0 %vm686_vm5, %v4938_v49 }
 0x1a4   : > { %3758 = vmatprep.mubr.msk.f32.mxu1 %vm686_vm5, %v4881_v40  ;;  %3862 = vmatprep.mubr.msk.f32.mxu0 %vm686_vm5, %v4944_v51 }
 0x1a7   : > { %3759 = vmatmul.mubr.msk.f32.gmra.mrb[6].mxu1 %vm686_vm5, %v4901_v42  ;;  %3863 = vmatmul.mubr.msk.f32.gmra.mrb[6].mxu0 %vm686_vm5, %v4958_v53 }
 0x1a8   : > { %3761 = vmatprep.mubr.msk.f32.mxu1 %vm686_vm5, %v4907_v44  ;;  %3865 = vmatprep.mubr.msk.f32.mxu0 %vm686_vm5, %v4964_v55 }
 0x1ab   : > { %3762 = vmatmul.mubr.msk.f32.gmra.mrb[8].mxu1 %vm686_vm5, %v4921_v46  ;;  %3866 = vmatmul.mubr.msk.f32.gmra.mrb[8].mxu0 %vm686_vm5, %v4978_v57 }
 0x1ac   : > { %3764 = vmatprep.mubr.msk.f32.mxu1 %vm686_vm5, %v4927_v48  ;;  %3868 = vmatprep.mubr.msk.f32.mxu0 %vm686_vm5, %v4984_v59 }
 0x1af   : > { %3765 = vmatmul.mubr.msk.f32.gmra.mrb[10].mxu1 %vm686_vm5, %v4941_v50  ;;  %3869 = vmatmul.mubr.msk.f32.gmra.mrb[10].mxu0 %vm686_vm5, %v4998_v61 }
 0x1b0   : > { %3767 = vmatprep.mubr.msk.f32.mxu1 %vm686_vm5, %v4947_v52  ;;  %3871 = vmatprep.mubr.msk.f32.mxu0 %vm686_vm5, %v3357_v2 }
 0x1b3   : > { %3768 = vmatmul.mubr.msk.f32.gmra.mrb[12].mxu1 %vm686_vm5, %v4961_v54  ;;  %3872 = vmatmul.mubr.msk.f32.gmra.mrb[12].mxu0 %vm686_vm5, %v3358_v3 }
 0x1b4   : > { %3770 = vmatprep.mubr.msk.f32.mxu1 %vm686_vm5, %v4967_v56  ;;  %3874 = vmatprep.mubr.msk.f32.mxu0 %vm686_vm5, %v3359_v4 }
 0x1b7   : > { %3771 = vmatmul.mubr.msk.f32.gmra.mrb[14].mxu1 %vm686_vm5, %v4981_v58  ;;  %3875 = vmatmul.mubr.msk.f32.gmra.mrb[14].mxu0 %vm686_vm5, %v3360_v5 }
 0x1b8   : > { %3775 = vmatprep.mubr.msk.f32.mxu1 %vm686_vm5, %v4848_v33  ;;  %3879 = vmatprep.mubr.msk.f32.mxu0 %vm686_vm5, %v4726_v13 }
 0x1bb   : > { %3776 = vmatmul.mubr.msk.f32.vlgmr.msra.gmra.mrb[0].mxu1 %vm686_vm5, %v4870_v37  ;;  %3880 = vmatmul.mubr.msk.f32.vlgmr.msra.gmra.mrb[0].mxu0 %vm686_vm5, %v4741_v16 }
 0x1bc   : > { %3904 = vmatpush3.msk.msra.mxu0 %vm735_vm4, %v3429_v1  ;;  %3778 = vmatprep.mubr.msk.f32.mxu1 %vm686_vm5, %v4878_v39 }
 0x1bd   : > { %3882 = vmatprep.mubr.msk.f32.mxu0 %vm686_vm5, %v4746_v17  ;;  %3930 = vmatpush3.msk.msra.mxu1 %vm735_vm4, %v2735_v10 }
 0x1bf   : > { %3779 = vmatmul.mubr.msk.f32.gmra.mrb[2].mxu1 %vm686_vm5, %v4898_v41  ;;  %3883 = vmatmul.mubr.msk.f32.gmra.mrb[2].mxu0 %vm686_vm5, %v4760_v18 }
 0x1c0   : > { %3781 = vmatprep.mubr.msk.f32.mxu1 %vm686_vm5, %v4904_v43  ;;  %3885 = vmatprep.mubr.msk.f32.mxu0 %vm686_vm5, %v4763_v19 }
 0x1c3   : > { %3782 = vmatmul.mubr.msk.f32.gmra.mrb[4].mxu1 %vm686_vm5, %v4918_v45  ;;  %3886 = vmatmul.mubr.msk.f32.gmra.mrb[4].mxu0 %vm686_vm5, %v4774_v20 }
 0x1c4   : > { %3784 = vmatprep.mubr.msk.f32.mxu1 %vm686_vm5, %v4924_v47  ;;  %3888 = vmatprep.mubr.msk.f32.mxu0 %vm686_vm5, %v4777_v21 }
 0x1c7   : > { %3785 = vmatmul.mubr.msk.f32.gmra.mrb[6].mxu1 %vm686_vm5, %v4938_v49  ;;  %3889 = vmatmul.mubr.msk.f32.gmra.mrb[6].mxu0 %vm686_vm5, %v4788_v22 }
 0x1c8   : > { %3787 = vmatprep.mubr.msk.f32.mxu1 %vm686_vm5, %v4944_v51  ;;  %3891 = vmatprep.mubr.msk.f32.mxu0 %vm686_vm5, %v4791_v23 }
 0x1cb   : > { %3788 = vmatmul.mubr.msk.f32.gmra.mrb[8].mxu1 %vm686_vm5, %v4958_v53  ;;  %3892 = vmatmul.mubr.msk.f32.gmra.mrb[8].mxu0 %vm686_vm5, %v4802_v24 }
 0x1cc   : > { %3790 = vmatprep.mubr.msk.f32.mxu1 %vm686_vm5, %v4964_v55  ;;  %3894 = vmatprep.mubr.msk.f32.mxu0 %vm686_vm5, %v4805_v25 }
 0x1cf   : > { %3791 = vmatmul.mubr.msk.f32.gmra.mrb[10].mxu1 %vm686_vm5, %v4978_v57  ;;  %3895 = vmatmul.mubr.msk.f32.gmra.mrb[10].mxu0 %vm686_vm5, %v4816_v26 }
 0x1d0   : > { %3793 = vmatprep.mubr.msk.f32.mxu1 %vm686_vm5, %v4984_v59  ;;  %3897 = vmatprep.mubr.msk.f32.mxu0 %vm686_vm5, %v4819_v27 }
 0x1d3   : > { %3794 = vmatmul.mubr.msk.f32.gmra.mrb[12].mxu1 %vm686_vm5, %v4998_v61  ;;  %3898 = vmatmul.mubr.msk.f32.gmra.mrb[12].mxu0 %vm686_vm5, %v4830_v28  ;;  %v5188_v28 = vld [vmem:[%s5378_s5] ss:$0 sm:$0xff] }
 0x1d4   : > { %3796 = vmatprep.mubr.msk.f32.mxu1 %vm686_vm5, %v3357_v2  ;;  %3900 = vmatprep.mubr.msk.f32.mxu0 %vm686_vm5, %v3393_v6 }
 0x1d7   : > { %3797 = vmatmul.mubr.msk.f32.gmra.mrb[14].mxu1 %vm686_vm5, %v3358_v3  ;;  %3901 = vmatmul.mubr.msk.f32.gmra.mrb[14].mxu0 %vm686_vm5, %v3394_v7 }
 0x1d8   : > { %3905 = vmatprep.mubr.msk.f32.mxu0 %vm686_vm5, %v4851_v34 }
 0x1db   : > { %3906 = vmatmul.mubr.msk.f32.vlgmr.msra.gmra.mrb[0].mxu0 %vm686_vm5, %v4873_v38 }
 0x1dc   : > { %3908 = vmatprep.mubr.msk.f32.mxu0 %vm686_vm5, %v4881_v40 }
 0x1df   : > { %3909 = vmatmul.mubr.msk.f32.gmra.mrb[2].mxu0 %vm686_vm5, %v4901_v42 }
 0x1e0   : > { %3911 = vmatprep.mubr.msk.f32.mxu0 %vm686_vm5, %v4907_v44 }
 0x1e3   : > { %3912 = vmatmul.mubr.msk.f32.gmra.mrb[4].mxu0 %vm686_vm5, %v4921_v46 }
 0x1e4   : > { %3914 = vmatprep.mubr.msk.f32.mxu0 %vm686_vm5, %v4927_v48 }
 0x1e7   : > { %3915 = vmatmul.mubr.msk.f32.gmra.mrb[6].mxu0 %vm686_vm5, %v4941_v50 }
 0x1e8   : > { %3917 = vmatprep.mubr.msk.f32.mxu0 %vm686_vm5, %v4947_v52 }
 0x1eb   : > { %3918 = vmatmul.mubr.msk.f32.gmra.mrb[8].mxu0 %vm686_vm5, %v4961_v54 }
 0x1ec   : > { %3920 = vmatprep.mubr.msk.f32.mxu0 %vm686_vm5, %v4967_v56 }
 0x1ef   : > { %3921 = vmatmul.mubr.msk.f32.gmra.mrb[10].mxu0 %vm686_vm5, %v4981_v58 }
 0x1f0   : > { %3923 = vmatprep.mubr.msk.f32.mxu0 %vm686_vm5, %v4987_v60 }
 0x1f3   : > { %3924 = vmatmul.mubr.msk.f32.gmra.mrb[12].mxu0 %vm686_vm5, %v5001_v62 }
 0x1f4   : > { %3926 = vmatprep.mubr.msk.f32.mxu0 %vm686_vm5, %v3427_v8 }
 0x1f7   : > { %3927 = vmatmul.mubr.msk.f32.gmra.mrb[14].mxu0 %vm686_vm5, %v3428_v9 }
 0x28e   : > { %v3777_v11 = vpop.f32.mrb[0].mxu1 }
 0x28f   : > { %v1448_v12 = vpop.f32.mrb[1].mxu1 }
 0x292   : > { %v3780_v13 = vpop.f32.mrb[2].mxu1 }
 0x293   : > { %v1458_v14 = vpop.f32.mrb[3].mxu1 }
 0x296   : > { %v3783_v15 = vpop.f32.mrb[4].mxu1 }
 0x297   : > { %v1468_v16 = vpop.f32.mrb[5].mxu1 }
 0x29a   : > { %v3786_v17 = vpop.f32.mrb[6].mxu1 }
 0x29b   : > { %v1478_v18 = vpop.f32.mrb[7].mxu1 }
 0x29e   : > { %v3789_v19 = vpop.f32.mrb[8].mxu1 }
 0x29f   : > { %v1488_v20 = vpop.f32.mrb[9].mxu1 }
 0x2a2   : > { %v3792_v21 = vpop.f32.mrb[10].mxu1 }
 0x2a3   : > { %v1498_v22 = vpop.f32.mrb[11].mxu1 }
 0x2a6   : > { %v3795_v23 = vpop.f32.mrb[12].mxu1 }
 0x2a7   : > { %v5179_v24 = vpop.f32.mrb[13].mxu1 }
 0x2aa   : > { %v5181_v25 = vpop.f32.mrb[14].mxu1 }
 0x2ab   : > { %v5183_v26 = vpop.f32.mrb[15].mxu1 }
 0x2ae   : > { %v3907_v27 = vpop.f32.mrb[0].mxu0 }
 0x2af   : > { %v3961_v29 = vadd.f32 %v3907_v27, %v3777_v11  ;;  %v2601_v30 = vpop.f32.mrb[1].mxu0 }
 0x2b0   : > { %v3962_v31 = vadd.f32 %v2601_v30, %v1448_v12 }
 0x2b1   : > { %v2704_v32 = vadd.f32 %v3961_v29, %v5188_v28 }
 0x2b2   : > { %v2703_v33 = vadd.f32 %v3962_v31, %v5188_v28  ;;  %v3910_v34 = vpop.f32.mrb[2].mxu0 }
 0x2b3   : > { %v3963_v35 = vadd.f32 %v3910_v34, %v3780_v13  ;;  %v2611_v36 = vpop.f32.mrb[3].mxu0  ;;  %v2720_v39 = vmax.f32 %v2704_v32, 0.0 }
 0x2b4   : > { %v2719_v37 = vmax.f32 %v2703_v33, 0.0  ;;  %v3964_v38 = vadd.f32 %v2611_v36, %v1458_v14  ;;  %v2941_v33 = vld [vmem:[%s5229_s21] sm:$0xff] }
 0x2b5   : > { %v2706_v40 = vadd.f32 %v3963_v35, %v5188_v28 }
 0x2b6   : > { %v2705_v41 = vadd.f32 %v3964_v38, %v5188_v28  ;;  %v3913_v42 = vpop.f32.mrb[4].mxu0  ;;  %3931 = vmatprep.mubr.msk.f32.mxu1 %vm686_vm5, %v2719_v37  ;;  %v2944_v38 = vld [vmem:[%s5229_s21 + $0x18] sm:$0xff] }
 0x2b7   : > { %v3965_v43 = vadd.f32 %v3913_v42, %v3783_v15  ;;  %v2621_v44 = vpop.f32.mrb[5].mxu0  ;;  %3932 = vmatmul.mubr.msk.f32.vlgmr.msra.gmra.mrb[16].mxu1 %vm686_vm5, %v2720_v39  ;;  %v2722_v47 = vmax.f32 %v2706_v40, 0.0  ;;  %v2943_v42 = vld [vmem:[%s5229_s21 + $0x10] sm:$0xff] }
 0x2b8   : > { %v2721_v45 = vmax.f32 %v2705_v41, 0.0  ;;  %v3966_v46 = vadd.f32 %v2621_v44, %v1468_v16 }
 0x2b9   : > { %v2708_v48 = vadd.f32 %v3965_v43, %v5188_v28 }
 0x2ba   : > { %v2707_v49 = vadd.f32 %v3966_v46, %v5188_v28  ;;  %v3916_v50 = vpop.f32.mrb[6].mxu0  ;;  %3934 = vmatprep.mubr.msk.f32.mxu1 %vm686_vm5, %v2721_v45 }
 0x2bb   : > { %v3967_v51 = vadd.f32 %v3916_v50, %v3786_v17  ;;  %v2631_v52 = vpop.f32.mrb[7].mxu0  ;;  %3935 = vmatmul.mubr.msk.f32.gmra.mrb[18].mxu1 %vm686_vm5, %v2722_v47  ;;  %v2724_v55 = vmax.f32 %v2708_v48, 0.0  ;;  %v2946_v48 = vld [vmem:[%s5229_s21 + $0x28] sm:$0xff] }
 0x2bc   : > { %v2723_v53 = vmax.f32 %v2707_v49, 0.0  ;;  %v3968_v54 = vadd.f32 %v2631_v52, %v1478_v18  ;;  %v2945_v52 = vld [vmem:[%s5229_s21 + $0x20] sm:$0xff] }
 0x2bd   : > { %v2710_v56 = vadd.f32 %v3967_v51, %v5188_v28 }
 0x2be   : > { %v2709_v57 = vadd.f32 %v3968_v54, %v5188_v28  ;;  %v3919_v58 = vpop.f32.mrb[8].mxu0  ;;  %3937 = vmatprep.mubr.msk.f32.mxu1 %vm686_vm5, %v2723_v53 }
 0x2bf   : > { %v3969_v59 = vadd.f32 %v3919_v58, %v3789_v19  ;;  %v2641_v60 = vpop.f32.mrb[9].mxu0  ;;  %3938 = vmatmul.mubr.msk.f32.gmra.mrb[20].mxu1 %vm686_vm5, %v2724_v55  ;;  %v2726_v63 = vmax.f32 %v2710_v56, 0.0  ;;  %v2948_v58 = vld [vmem:[%s5229_s21 + $0x38] sm:$0xff] }
 0x2c0   : > { %v2725_v61 = vmax.f32 %v2709_v57, 0.0  ;;  %v3970_v62 = vadd.f32 %v2641_v60, %v1488_v20 }
 0x2c1   : > { %v2712_v0 = vadd.f32 %v3969_v59, %v5188_v28 }
 0x2c2   : > { %v2711_v1 = vadd.f32 %v3970_v62, %v5188_v28  ;;  %v3922_v2 = vpop.f32.mrb[10].mxu0  ;;  %3940 = vmatprep.mubr.msk.f32.mxu1 %vm686_vm5, %v2725_v61  ;;  %v2947_v62 = vld [vmem:[%s5229_s21 + $0x30] sm:$0xff] }
 0x2c3   : > { %v3971_v3 = vadd.f32 %v3922_v2, %v3792_v21  ;;  %v2651_v4 = vpop.f32.mrb[11].mxu0  ;;  %3941 = vmatmul.mubr.msk.f32.gmra.mrb[22].mxu1 %vm686_vm5, %v2726_v63  ;;  %v2728_v7 = vmax.f32 %v2712_v0, 0.0 }
 0x2c4   : > { %v2727_v5 = vmax.f32 %v2711_v1, 0.0  ;;  %v3972_v6 = vadd.f32 %v2651_v4, %v1498_v22  ;;  %v2950_v4 = vld [vmem:[%s5229_s21 + $0x48] sm:$0xff] }
 0x2c5   : > { %v2714_v8 = vadd.f32 %v3971_v3, %v5188_v28 }
 0x2c6   : > { %v2713_v9 = vadd.f32 %v3972_v6, %v5188_v28  ;;  %v3925_v10 = vpop.f32.mrb[12].mxu0  ;;  %3943 = vmatprep.mubr.msk.f32.mxu1 %vm686_vm5, %v2727_v5 }
 0x2c7   : > { %v3973_v11 = vadd.f32 %v3925_v10, %v3795_v23  ;;  %v2661_v12 = vpop.f32.mrb[13].mxu0  ;;  %3944 = vmatmul.mubr.msk.f32.gmra.mrb[24].mxu1 %vm686_vm5, %v2728_v7  ;;  %v2730_v15 = vmax.f32 %v2714_v8, 0.0  ;;  %v2949_v8 = vld [vmem:[%s5229_s21 + $0x40] sm:$0xff] }
 0x2c8   : > { %v2729_v13 = vmax.f32 %v2713_v9, 0.0  ;;  %v3974_v14 = vadd.f32 %v2661_v12, %v5179_v24 }
 0x2c9   : > { %v2716_v16 = vadd.f32 %v3973_v11, %v5188_v28 }
 0x2ca   : > { %v2715_v17 = vadd.f32 %v3974_v14, %v5188_v28  ;;  %v3928_v18 = vpop.f32.mrb[14].mxu0  ;;  %3946 = vmatprep.mubr.msk.f32.mxu1 %vm686_vm5, %v2729_v13  ;;  %v2952_v14 = vld [vmem:[%s5229_s21 + $0x58] sm:$0xff] }
 0x2cb   : > { %v3975_v19 = vadd.f32 %v3928_v18, %v5181_v25  ;;  %v2671_v20 = vpop.f32.mrb[15].mxu0  ;;  %3947 = vmatmul.mubr.msk.f32.gmra.mrb[26].mxu1 %vm686_vm5, %v2730_v15  ;;  %v2732_v23 = vmax.f32 %v2716_v16, 0.0  ;;  %v5234_v25 = vld [vmem:[%s5379_s6] ss:$0 sm:$0xff]  ;;  %v2951_v18 = vld [vmem:[%s5229_s21 + $0x50] sm:$0xff] }
 0x2cc   : > { %v2731_v21 = vmax.f32 %v2715_v17, 0.0  ;;  %v3976_v22 = vadd.f32 %v2671_v20, %v5183_v26 }
 0x2cd   : > { %v2718_v24 = vadd.f32 %v3975_v19, %v5188_v28 }
 0x2ce   : > { %v2717_v27 = vadd.f32 %v3976_v22, %v5188_v28  ;;  %3949 = vmatprep.mubr.msk.f32.mxu1 %vm686_vm5, %v2731_v21  ;;  %v2942_v28 = vld [vmem:[%s5229_s21 + $0x8] sm:$0xff] }
 0x2cf   : > { %3950 = vmatmul.mubr.msk.f32.gmra.mrb[28].mxu1 %vm686_vm5, %v2732_v23  ;;  %v2734_v30 = vmax.f32 %v2718_v24, 0.0  ;;  %v2954_v24 = vld [vmem:[%s5229_s21 + $0x68] sm:$0xff] }
 0x2d0   : > { %v2733_v29 = vmax.f32 %v2717_v27, 0.0 }
 0x2d2   : > { %3952 = vmatprep.mubr.msk.f32.mxu1 %vm686_vm5, %v2733_v29 }
 0x2d3   : > { %3953 = vmatmul.mubr.msk.f32.gmra.mrb[30].mxu1 %vm686_vm5, %v2734_v30 }
 0x38a   : > { %v3933_v26 = vpop.f32.mrb[16].mxu1 }
 0x38b   : > { %v2866_v31 = vadd.f32 %v3933_v26, %v5234_v25  ;;  %v2860_v32 = vpop.f32.mrb[17].mxu1  ;;  %v2953_v26 = vld [vmem:[%s5229_s21 + $0x60] sm:$0xff] }
 0x38c   : > { %v2861_v34 = vadd.f32 %v5234_v25, %v2860_v32 }
 0x38d   : > { %v2958_v35 = vadd.f32 %v2942_v28, %v2866_v31 }
 0x38e   : > { %v2957_v36 = vadd.f32 %v2941_v33, %v2861_v34  ;;  %v3936_v37 = vpop.f32.mrb[18].mxu1 }
 0x38f   : > { %v2974_v39 = vmax.f32 %v2958_v35, 0.0  ;;  %v2876_v40 = vadd.f32 %v3936_v37, %v5234_v25  ;;  %v2870_v41 = vpop.f32.mrb[19].mxu1  ;;  %v2956_v35 = vld [vmem:[%s5229_s21 + $0x78] sm:$0xff] }
 0x390   : > { %v2973_v43 = vmax.f32 %v2957_v36, 0.0  ;;  %v2871_v44 = vadd.f32 %v5234_v25, %v2870_v41 }
 0x391   : > { %2991 = vst.msk [vmem:[%s4556_s22 + $0x8] sm:$0xff] %vm2989_vm6, %v2974_v39  ;;  %v2960_v45 = vadd.f32 %v2944_v38, %v2876_v40  ;;  %v2955_v39 = vld [vmem:[%s5229_s21 + $0x70] sm:$0xff] }
 0x392   : > { %2990 = vst.msk [vmem:[%s4556_s22] sm:$0xff] %vm2989_vm6, %v2973_v43  ;;  %v2959_v46 = vadd.f32 %v2943_v42, %v2871_v44  ;;  %v3939_v47 = vpop.f32.mrb[20].mxu1 }
 0x393   : > { %v2976_v49 = vmax.f32 %v2960_v45, 0.0  ;;  %v2886_v50 = vadd.f32 %v3939_v47, %v5234_v25  ;;  %v2880_v51 = vpop.f32.mrb[21].mxu1 }
 0x394   : > { %v2975_v53 = vmax.f32 %v2959_v46, 0.0  ;;  %v2881_v54 = vadd.f32 %v5234_v25, %v2880_v51 }
 0x395   : > { %2993 = vst.msk [vmem:[%s4556_s22 + $0x18] sm:$0xff] %vm2989_vm6, %v2976_v49  ;;  %v2962_v55 = vadd.f32 %v2946_v48, %v2886_v50 }
 0x396   : > { %2992 = vst.msk [vmem:[%s4556_s22 + $0x10] sm:$0xff] %vm2989_vm6, %v2975_v53  ;;  %v2961_v56 = vadd.f32 %v2945_v52, %v2881_v54  ;;  %v3942_v57 = vpop.f32.mrb[22].mxu1 }
 0x397   : > { %v2978_v59 = vmax.f32 %v2962_v55, 0.0  ;;  %v2896_v60 = vadd.f32 %v3942_v57, %v5234_v25  ;;  %v2890_v61 = vpop.f32.mrb[23].mxu1 }
 0x398   : > { %v2977_v63 = vmax.f32 %v2961_v56, 0.0  ;;  %v2891_v0 = vadd.f32 %v5234_v25, %v2890_v61 }
 0x399   : > { %2995 = vst.msk [vmem:[%s4556_s22 + $0x28] sm:$0xff] %vm2989_vm6, %v2978_v59  ;;  %v2964_v1 = vadd.f32 %v2948_v58, %v2896_v60 }
 0x39a   : > { %2994 = vst.msk [vmem:[%s4556_s22 + $0x20] sm:$0xff] %vm2989_vm6, %v2977_v63  ;;  %v2963_v2 = vadd.f32 %v2947_v62, %v2891_v0  ;;  %v3945_v3 = vpop.f32.mrb[24].mxu1 }
 0x39b   : > { %v2980_v5 = vmax.f32 %v2964_v1, 0.0  ;;  %v2906_v6 = vadd.f32 %v3945_v3, %v5234_v25  ;;  %v2900_v7 = vpop.f32.mrb[25].mxu1 }
 0x39c   : > { %v2979_v9 = vmax.f32 %v2963_v2, 0.0  ;;  %v2901_v10 = vadd.f32 %v5234_v25, %v2900_v7 }
 0x39d   : > { %2997 = vst.msk [vmem:[%s4556_s22 + $0x38] sm:$0xff] %vm2989_vm6, %v2980_v5  ;;  %v2966_v11 = vadd.f32 %v2950_v4, %v2906_v6 }
 0x39e   : > { %2996 = vst.msk [vmem:[%s4556_s22 + $0x30] sm:$0xff] %vm2989_vm6, %v2979_v9  ;;  %v2965_v12 = vadd.f32 %v2949_v8, %v2901_v10  ;;  %v3948_v13 = vpop.f32.mrb[26].mxu1 }
 0x39f   : > { %v2982_v15 = vmax.f32 %v2966_v11, 0.0  ;;  %v2916_v16 = vadd.f32 %v3948_v13, %v5234_v25  ;;  %v2910_v17 = vpop.f32.mrb[27].mxu1 }
 0x3a0   : > { %v2981_v19 = vmax.f32 %v2965_v12, 0.0  ;;  %v2911_v20 = vadd.f32 %v5234_v25, %v2910_v17 }
 0x3a1   : > { %2999 = vst.msk [vmem:[%s4556_s22 + $0x48] sm:$0xff] %vm2989_vm6, %v2982_v15  ;;  %v2968_v21 = vadd.f32 %v2952_v14, %v2916_v16 }
 0x3a2   : > { %2998 = vst.msk [vmem:[%s4556_s22 + $0x40] sm:$0xff] %vm2989_vm6, %v2981_v19  ;;  %v2967_v22 = vadd.f32 %v2951_v18, %v2911_v20  ;;  %v3951_v23 = vpop.f32.mrb[28].mxu1 }
 0x3a3   : > { %v2984_v27 = vmax.f32 %v2968_v21, 0.0  ;;  %v2926_v29 = vadd.f32 %v3951_v23, %v5234_v25  ;;  %v2920_v30 = vpop.f32.mrb[29].mxu1 }
 0x3a4   : > { %v2983_v28 = vmax.f32 %v2967_v22, 0.0  ;;  %v2921_v31 = vadd.f32 %v5234_v25, %v2920_v30 }
 0x3a5   : > { %3001 = vst.msk [vmem:[%s4556_s22 + $0x58] sm:$0xff] %vm2989_vm6, %v2984_v27  ;;  %v2970_v32 = vadd.f32 %v2954_v24, %v2926_v29 }
 0x3a6   : > { %3000 = vst.msk [vmem:[%s4556_s22 + $0x50] sm:$0xff] %vm2989_vm6, %v2983_v28  ;;  %v2969_v33 = vadd.f32 %v2953_v26, %v2921_v31  ;;  %v3954_v34 = vpop.f32.mrb[30].mxu1 }
 0x3a7   : > { %v2986_v36 = vmax.f32 %v2970_v32, 0.0  ;;  %v2936_v37 = vadd.f32 %v3954_v34, %v5234_v25  ;;  %v2930_v38 = vpop.f32.mrb[31].mxu1 }
 0x3a8   : > { %v2985_v40 = vmax.f32 %v2969_v33, 0.0  ;;  %v2931_v41 = vadd.f32 %v5234_v25, %v2930_v38 }
 0x3a9   : > { %3003 = vst.msk [vmem:[%s4556_s22 + $0x68] sm:$0xff] %vm2989_vm6, %v2986_v36  ;;  %v2972_v42 = vadd.f32 %v2956_v35, %v2936_v37 }
 0x3aa   : > { %3002 = vst.msk [vmem:[%s4556_s22 + $0x60] sm:$0xff] %vm2989_vm6, %v2985_v40  ;;  %v2971_v43 = vadd.f32 %v2955_v39, %v2931_v41 }
 0x3ab   : > { %v2988_v44 = vmax.f32 %v2972_v42, 0.0 }
 0x3ac   : > { %v2987_v45 = vmax.f32 %v2971_v43, 0.0 }
 0x3ad   : > { %3005 = vst.msk [vmem:[%s4556_s22 + $0x78] sm:$0xff] %vm2989_vm6, %v2988_v44 }
 0x3ae   : > { %3004 = vst.msk [vmem:[%s4556_s22 + $0x70] sm:$0xff] %vm2989_vm6, %v2987_v45 }
 0x3af PF: > { %s3468_s12 = sadd.s32 4294967295, %s4332_s30  ;;  %s3471_s18 = sshll.u32 %s4336_s8, 5 }
 0x3b0   : > { %p3015_p6 = scmp.gt.s32.totalorder %s3468_s12, 0  ;;  %s3026_s23 = sshll.u32 %s4556_s22, 4  ;;  %s5303_s23 = int_to_ptr.vmem [resolvable:$true] %s3026_s23 }
 0x3b1   : > { %s5399_s17 = sand.u32 1, %s4312_s25   ;;  %s4226_s30 = scalar_lea.vmem %s5303_s23, 2048 }
 0x3b2   : > { %s5427_s12 = smov (!%p3015_p6, %s3468_s12), 0  ;;  %s5312_s13 = scalar_lea.sflag [#allocation5], %s5399_s17 }
 0x3b3   : > { %s3478_s15 = sshll.u32 %s5427_s12, 4  ;;  %p4227_p2 = scmp.ne.s32.totalorder %s5303_s23, %s4226_s30 }
 0x3b4   : > { %s3023_s20 = sadd.s32 %s3478_s15, %s3471_s18  ;;  %p5400_p4 = scmp.ne.s32.totalorder %s5394_s14, 0 }
 0x3b5   : > { %s3472_s24 = sshll.u32 %s3023_s20, 7  ;;  %s4354_s8 = smov [#allocation6]  }
 0x3b6   : > { %s5308_s21 = scalar_lea.hbm %s5380_s7, %s3472_s24  ;;  %p4228_p9 = pnand %p4227_p2, %p5400_p4 }
 0x3b7   : > { %s4230_s22 = sshll.u32 %s4354_s8, 4  ;;  %s4231_s22 = int_to_ptr.vmem [resolvable:$false] %s4230_s22 }
 0x3b8   : > { %p4229_p11 = pneg %p4228_p9  ;;  %s4232_s12 = scalar_lea.vmem %s4231_s22, 4096 }
 0x3b9   : > { %p4233_p3 = scmp.lt.s32.totalorder %s5303_s23, %s4231_s22  ;;  %p4234_p13 = scmp.lt.s32.totalorder %s4232_s12, %s4226_s30 }
 0x3bb   : > { %p4235_p1 = por %p4234_p13, %p4233_p3 }
 0x3bd   : > { %p4236_p8 = pnand %p4235_p1, %p4229_p11 }
 0x3bf   : > { %4239 = shalt.err (!%p4236_p8)
}
 0x3c0   : > { %s4240_s18 = scalar_lea.hbm %s5308_s21, 2048  ;;  %s4244_s24 = scalar_lea.hbm %s5380_s7, 8192 }
 0x3c1   : > { %p4241_p10 = scmp.ne.s32.totalorder %s5308_s21, %s4240_s18  ;;  %p4245_p7 = scmp.lt.u32.totalorder %s5308_s21, %s5380_s7 }
 0x3c2   : > { %p4246_p5 = scmp.lt.u32.totalorder %s4244_s24, %s4240_s18  ;;  %p4248_p2 = scmp.lt.u32.totalorder %s4240_s18, %s5308_s21 }
 0x3c3   : > { %p4242_p12 = pnand %p4241_p10, %p5400_p4 }
 0x3c4   : > { %p4247_p6 = por %p4246_p5, %p4245_p7 }
 0x3c5   : > { %p4243_p0 = pneg %p4242_p12 }
 0x3c6   : > { %p4249_p9 = por %p4248_p2, %p4247_p6 }
 0x3c8   : > { %p4250_p11 = pnand %p4249_p9, %p4243_p0 }
 0x3ca   : > { %4253 = shalt.err (!%p4250_p11)
}
 0x3cb   : > { %s4355_s17 = smov 128   ;;  %s4356_s30 = smov 8  }
 0x3cc   : > { %4091 = dma.vmem_to_hbm [thread:$0]  (%p5400_p4), %s5303_s23, 2048, %s5308_s21, %s5312_s13, %s4355_s17, %s4355_s17, %s4356_s30  }
 0x3cd PF: > { %s5401_s8 = sld [smem:[#allocation9_spill]]  ;;  %p4102_p3 = scmp.ge.s32.totalorder %s4348_s11, 2 }
 0x3ce   : > { %p5402_p13 = scmp.ne.s32.totalorder %s5396_s16, 0 }
 0x3d0   : > { %p4098_p1 = pnand %p4102_p3, %p5402_p13 }
 0x3d3   : > { %s3041_s22 = sand.u32 1, %s5401_s8  }
 0x3d4   : > { %s3042_s12 = scalar_lea.sflag [#allocation5], %s3041_s22 }
 0x3d5   : > { %4303 = dma.done.wait (!%p4098_p1), %s3042_s12, 2048  }
 0x3d6   : > { %4305 = vsyncadd (!%p4098_p1), %s3042_s12, 4294965248  ;;  %s23_s11 = sadd.s32 1, %s4348_s11   ;;  %s5403_s14 = sld [smem:[#allocation13_spill]] }
 0x3d7   : > { %p20_p8 = scmp.ge.s32.totalorder %s23_s11, 8   ;;  %s5404_s30 = sld [smem:[#allocation10_spill]] }
 0x3d8   : > { %s5405_s23 = sld [smem:[#allocation11_spill]]  ;;  %s5406_s21 = sld [smem:[#allocation12_spill]] }
 0x3d9   : > { %s5407_s24 = smov %s4312_s25  ;;  %s5408_s25 = smov %s4316_s26 }
 0x3da   : > { %s5409_s26 = smov %s4492_s9  ;;  %s5410_s27 = smov %s4324_s28 }
 0x3db   : > { %s5411_s28 = smov %s4328_s29  ;;  %s5413_s8 = smov %s4344_s10 }
 0x3dc   : > { %s5412_s29 = smov %s5403_s14  ;;  %22 = sbr.rel (!%p20_p8) target bundleno = 9 (0x9), region = 119 }
 0x3de   : > { %s5414_s9 = smov %s5405_s23  ;;  %s5415_s10 = smov %s5406_s21 }
 0x3e3   :  { %3047 = vsyncpa [#allocation4], 1 }
 0x3e4   :  { %3049 = vsyncpa [#allocation4 + $0x1], 1 }
 0x3e5   :  { %3050 = vsyncpa [#allocation5], 1 }
 0x3e6   :  { %3052 = vsyncpa [#allocation5 + $0x1], 1 }

</bundles_post_ra>
